<compile_context>
chip_gen: v7x
topology: tpu7x:2x2x1
jax: 0.10.0
libtpu: 0.0.40
codegen_flags: <defaults>
</compile_context>

<pallas_src>
import functools

import numpy as np
import jax
import jax.numpy as jnp
from jax.experimental import pallas as pl
from jax.experimental.pallas import tpu as pltpu

NEG_SLOPE = 0.01  # nn.LeakyReLU default


def _leaky(x):
    return jnp.where(x > 0, x, NEG_SLOPE * x)


# ---------------------------------------------------------------------------
# Fused CNNnn forward kernel
# ---------------------------------------------------------------------------
def _fused_cnnnn_kernel(H, W, CP, n_layers, *refs):
    """refs = (x, w1, b1, w2, b2, [wp_l, kd_l, bd_l]*n_layers, out, slab)

      x   : [H*W, Cin]   channels-last input pixels
      w1  : [Cin, CP], b1: [1, CP]    BN1 folded into Conv1, channels padded to CP
      w2  : [CP, CP],  b2: [1, CP]    BN2 folded into Conv2
      wp_l: [CP, CP]                  point_conv (1x1, no bias)
      kd_l: [3, 3, CP]                depthwise 3x3 weights
      bd_l: [1, 1, CP]                depthwise bias
      out : [H*W, hide]
      slab: VMEM scratch [H+2, W+2, CP]  zero-bordered spatial halo slab
    """
    x_ref, w1_ref, b1_ref, w2_ref, b2_ref = refs[:5]
    branch_refs = refs[5:5 + 3 * n_layers]
    out_ref = refs[5 + 3 * n_layers]
    slab_ref = refs[6 + 3 * n_layers]

    N = H * W

    # --- CNN_denoise: (BN1 folded into Conv1) -> LeakyReLU -> (BN2 folded into Conv2) -> LeakyReLU
    h = x_ref[...].astype(jnp.float32)
    h = _leaky(jnp.dot(h, w1_ref[...], preferred_element_type=jnp.float32) + b1_ref[...])
    h = _leaky(jnp.dot(h, w2_ref[...], preferred_element_type=jnp.float32) + b2_ref[...])

    # Zero the halo slab once; per-layer writes only touch the interior, so the
    # 1-pixel zero border (= Conv2d padding=1) persists across branch layers.
    slab_ref[...] = jnp.zeros(slab_ref.shape, slab_ref.dtype)

    # --- CNN branch layers: point_conv(1x1) -> LeakyReLU -> depthwise 3x3 + bias -> LeakyReLU
    for l in range(n_layers):
        wp_ref, kd_ref, bd_ref = branch_refs[3 * l: 3 * l + 3]

        p = _leaky(jnp.dot(h, wp_ref[...], preferred_element_type=jnp.float32))  # [N, CP]

        # In-kernel zero padding: write the interior of the halo slab.
        slab_ref[1:H + 1, 1:W + 1, :] = p.reshape(H, W, CP)

        # 9-tap depthwise accumulation; lane dim (CP=128) is always fully dense.
        acc = jnp.zeros((H, W, CP), jnp.float32)
        for ti in range(3):
            for tj in range(3):
                tap = slab_ref[ti:ti + H, tj:tj + W, :]
                acc = acc + tap * kd_ref[ti:ti + 1, tj:tj + 1, :]

        h = _leaky(acc + bd_ref[...]).reshape(N, CP)
        # F.dropout(p=0) -> identity

    out_ref[...] = h[:, :out_ref.shape[1]].astype(out_ref.dtype)


# ---------------------------------------------------------------------------
# Parameter prep: fold BN into 1x1 convs, pad channel dim to a lane-dense 128 multiple
# ---------------------------------------------------------------------------
def _prepare_weights(params, W):
    hide = params["w1"].shape[1]
    CP = ((hide + 127) // 128) * 128
    pad = CP - hide

    s1, t1 = params["bn1_scale"], params["bn1_shift"]   # [1, Cin]
    s2, t2 = params["bn2_scale"], params["bn2_shift"]   # [1, hide]
    w1, b1 = params["w1"], params["b1"]
    w2, b2 = params["w2"], params["b2"]

    # conv(x * s + t) == x @ (diag(s) @ w) + (t @ w + b)
    w1f = w1 * s1.reshape(-1, 1)
    b1f = b1 + t1 @ w1
    w2f = w2 * s2.reshape(-1, 1)
    b2f = b2 + t2 @ w2

    pad_cols = lambda a: jnp.pad(a, ((0, 0), (0, pad)))
    w1p = pad_cols(w1f)                                      # [Cin, CP]
    b1p = pad_cols(b1f)                                      # [1, CP]
    w2p = jnp.pad(w2f, ((0, pad), (0, pad)))                 # [CP, CP]
    b2p = pad_cols(b2f)                                      # [1, CP]

    flat = [w1p, b1p, w2p, b2p]
    for layer in params["branch"]:
        wp = jnp.pad(layer["wp"], ((0, pad), (0, pad)))                      # [CP, CP]
        kd = jnp.pad(layer["kd"], ((0, 0), (0, 0), (0, pad)))                # [3, 3, CP]
        bd = jnp.pad(layer["bd"], (0, pad)).reshape(1, 1, CP)                # [1, 1, CP]
        flat += [wp, kd, bd]
    return CP, hide, flat


def cnnnn_forward(x_hwc, params):
    H, W, Cin = x_hwc.shape
    n_layers = len(params["branch"])
    CP, hide, weight_args = _prepare_weights(params, W)
    x2d = x_hwc.reshape(H * W, Cin)

    kernel = functools.partial(_fused_cnnnn_kernel, H, W, CP, n_layers)
    out = pl.pallas_call(
        kernel,
        out_shape=jax.ShapeDtypeStruct((H * W, hide), jnp.float32),
        scratch_shapes=[pltpu.VMEM((H + 2, W + 2, CP), jnp.float32)],
    )(x2d, *weight_args)
    return out  # [H*W, hide]


# ---------------------------------------------------------------------------
# Pure-JAX reference (unfused, unfolded) for verification
# ---------------------------------------------------------------------------
def cnnnn_reference(x_hwc, params):
    H, W, C = x_hwc.shape
    hide = params["w1"].shape[1]
    h = x_hwc.reshape(-1, C)
    h = _leaky((h * params["bn1_scale"] + params["bn1_shift"]) @ params["w1"] + params["b1"])
    h = _leaky((h * params["bn2_scale"] + params["bn2_shift"]) @ params["w2"] + params["b2"])
    for layer in params["branch"]:
        p = _leaky(h @ layer["wp"]).reshape(H, W, hide)
        pp = jnp.pad(p, ((1, 1), (1, 1), (0, 0)))
        acc = jnp.zeros((H, W, hide), jnp.float32)
        for i in range(3):
            for j in range(3):
                acc = acc + pp[i:i + H, j:j + W, :] * layer["kd"][i, j][None, None, :]
        h = _leaky(acc + layer["bd"][None, None, :]).reshape(-1, hide)
    return h


# ---------------------------------------------------------------------------
# Deterministic example parameters
# ---------------------------------------------------------------------------
def make_params(key, changel, hide, layers_count=2):
    eps = 1e-5
    ks = iter(jax.random.split(key, 12 + 3 * layers_count))
    nxt = lambda: next(ks)

    def bn_affine(ch):
        gamma = 1.0 + 0.1 * jax.random.normal(nxt(), (1, ch), jnp.float32)
        beta = 0.1 * jax.random.normal(nxt(), (1, ch), jnp.float32)
        mean = 0.1 * jax.random.normal(nxt(), (1, ch), jnp.float32)
        var = 0.5 + jnp.abs(jax.random.normal(nxt(), (1, ch), jnp.float32))
        scale = gamma / jnp.sqrt(var + eps)
        shift = beta - mean * scale
        return scale, shift

    bn1_scale, bn1_shift = bn_affine(changel)
    bn2_scale, bn2_shift = bn_affine(hide)

    # torch Conv2d weight [out, in, 1, 1] -> stored here as [in, out]
    w1 = 0.1 * jax.random.normal(nxt(), (changel, hide), jnp.float32)
    b1 = 0.1 * jax.random.normal(nxt(), (1, hide), jnp.float32)
    w2 = 0.1 * jax.random.normal(nxt(), (hide, hide), jnp.float32)
    b2 = 0.1 * jax.random.normal(nxt(), (1, hide), jnp.float32)

    branch = []
    for _ in range(layers_count):
        branch.append(dict(
            wp=0.1 * jax.random.normal(nxt(), (hide, hide), jnp.float32),      # point_conv (no bias)
            kd=0.1 * jax.random.normal(nxt(), (3, 3, hide), jnp.float32),      # depth_conv [C,1,3,3] -> [3,3,C]
            bd=0.1 * jax.random.normal(nxt(), (hide,), jnp.float32),           # depth_conv bias
        ))

    return dict(bn1_scale=bn1_scale, bn1_shift=bn1_shift, w1=w1, b1=b1,
                bn2_scale=bn2_scale, bn2_shift=bn2_shift, w2=w2, b2=b2,
                branch=branch)


if __name__ == "__main__":
    # Module config: CNNnn(height=8, width=8, changel=16, class_count=4, hide=32, droupout=0)
    height, width, changel, hide = 8, 8, 16, 32

    key = jax.random.PRNGKey(0)
    kx, kp = jax.random.split(key)
    x = jax.random.normal(kx, (height, width, changel), jnp.float32)  # torch input x: [H, W, C]
    params = make_params(kp, changel, hide, layers_count=2)

    fwd = jax.jit(cnnnn_forward)
    out = jax.block_until_ready(fwd(x, params))
    assert out.shape == (height * width, hide), out.shape

    ref = jax.block_until_ready(cnnnn_reference(x, params))
    np.testing.assert_allclose(np.asarray(out), np.asarray(ref), rtol=5e-4, atol=5e-5)

    print("KERNEL_OK")
</pallas_src>

<mosaic_0001>
module attributes {stable_mosaic.version = 11 : i64} {
  func.func @_fused_cnnnn_kernel(%arg0: memref<64x16xf32, #tpu.memory_space<vmem>>, %arg1: memref<16x128xf32, #tpu.memory_space<vmem>>, %arg2: memref<1x128xf32, #tpu.memory_space<vmem>>, %arg3: memref<128x128xf32, #tpu.memory_space<vmem>>, %arg4: memref<1x128xf32, #tpu.memory_space<vmem>>, %arg5: memref<128x128xf32, #tpu.memory_space<vmem>>, %arg6: memref<3x3x128xf32, #tpu.memory_space<vmem>>, %arg7: memref<1x1x128xf32, #tpu.memory_space<vmem>>, %arg8: memref<128x128xf32, #tpu.memory_space<vmem>>, %arg9: memref<3x3x128xf32, #tpu.memory_space<vmem>>, %arg10: memref<1x1x128xf32, #tpu.memory_space<vmem>>, %arg11: memref<64x32xf32, #tpu.memory_space<vmem>>, %arg12: memref<10x10x128xf32, #tpu.memory_space<vmem>>) attributes {dimension_semantics = [], scalar_prefetch = 0 : i64, scratch_operands = 1 : i64, tpu.core_type = #tpu.core_type<tc>} {
    %c0 = arith.constant 0 : index
    %c0_0 = arith.constant 0 : index
    %0 = vector.load %arg0[%c0, %c0_0] : memref<64x16xf32, #tpu.memory_space<vmem>>, vector<64x16xf32>
    %c0_1 = arith.constant 0 : index
    %c0_2 = arith.constant 0 : index
    %1 = vector.load %arg1[%c0_1, %c0_2] : memref<16x128xf32, #tpu.memory_space<vmem>>, vector<16x128xf32>
    %cst = arith.constant dense<0.000000e+00> : vector<64x128xf32>
    %2 = tpu.matmul %0, %1, %cst {dimension_numbers = #tpu.dot_dimension_numbers<[1], [0], [0], [1], [0, 0, 1, 1], [], []>} : vector<64x16xf32>, vector<16x128xf32>, vector<64x128xf32> -> vector<64x128xf32>
    %c0_3 = arith.constant 0 : index
    %c0_4 = arith.constant 0 : index
    %3 = vector.load %arg2[%c0_3, %c0_4] : memref<1x128xf32, #tpu.memory_space<vmem>>, vector<1x128xf32>
    %4 = vector.broadcast %3 : vector<1x128xf32> to vector<64x128xf32>
    %5 = arith.addf %2, %4 : vector<64x128xf32>
    %cst_5 = arith.constant 0.000000e+00 : f32
    %6 = vector.broadcast %cst_5 : f32 to vector<64x128xf32>
    %7 = arith.cmpf ogt, %5, %6 : vector<64x128xf32>
    %cst_6 = arith.constant 0.00999999977 : f32
    %8 = vector.broadcast %cst_6 : f32 to vector<64x128xf32>
    %9 = arith.mulf %8, %5 : vector<64x128xf32>
    %10 = arith.select %7, %5, %9 : vector<64x128xi1>, vector<64x128xf32>
    %c0_7 = arith.constant 0 : index
    %c0_8 = arith.constant 0 : index
    %11 = vector.load %arg3[%c0_7, %c0_8] : memref<128x128xf32, #tpu.memory_space<vmem>>, vector<128x128xf32>
    %cst_9 = arith.constant dense<0.000000e+00> : vector<64x128xf32>
    %12 = tpu.matmul %10, %11, %cst_9 {dimension_numbers = #tpu.dot_dimension_numbers<[1], [0], [0], [1], [0, 0, 1, 1], [], []>} : vector<64x128xf32>, vector<128x128xf32>, vector<64x128xf32> -> vector<64x128xf32>
    %c0_10 = arith.constant 0 : index
    %c0_11 = arith.constant 0 : index
    %13 = vector.load %arg4[%c0_10, %c0_11] : memref<1x128xf32, #tpu.memory_space<vmem>>, vector<1x128xf32>
    %14 = vector.broadcast %13 : vector<1x128xf32> to vector<64x128xf32>
    %15 = arith.addf %12, %14 : vector<64x128xf32>
    %cst_12 = arith.constant 0.000000e+00 : f32
    %16 = vector.broadcast %cst_12 : f32 to vector<64x128xf32>
    %17 = arith.cmpf ogt, %15, %16 : vector<64x128xf32>
    %cst_13 = arith.constant 0.00999999977 : f32
    %18 = vector.broadcast %cst_13 : f32 to vector<64x128xf32>
    %19 = arith.mulf %18, %15 : vector<64x128xf32>
    %20 = arith.select %17, %15, %19 : vector<64x128xi1>, vector<64x128xf32>
    %cst_14 = arith.constant 0.000000e+00 : f32
    %21 = vector.broadcast %cst_14 : f32 to vector<10x10x128xf32>
    %c0_15 = arith.constant 0 : index
    %c0_16 = arith.constant 0 : index
    %c0_17 = arith.constant 0 : index
    %22 = vector.load %arg12[%c0_15, %c0_16, %c0_17] : memref<10x10x128xf32, #tpu.memory_space<vmem>>, vector<10x10x128xf32>
    tpu.vector_store %arg12[%c0_15, %c0_16, %c0_17], %21 {strides = array<i32>} : memref<10x10x128xf32, #tpu.memory_space<vmem>>, vector<10x10x128xf32>,
    %c0_18 = arith.constant 0 : index
    %c0_19 = arith.constant 0 : index
    %23 = vector.load %arg5[%c0_18, %c0_19] : memref<128x128xf32, #tpu.memory_space<vmem>>, vector<128x128xf32>
    %cst_20 = arith.constant dense<0.000000e+00> : vector<64x128xf32>
    %24 = tpu.matmul %20, %23, %cst_20 {dimension_numbers = #tpu.dot_dimension_numbers<[1], [0], [0], [1], [0, 0, 1, 1], [], []>} : vector<64x128xf32>, vector<128x128xf32>, vector<64x128xf32> -> vector<64x128xf32>
    %cst_21 = arith.constant 0.000000e+00 : f32
    %25 = vector.broadcast %cst_21 : f32 to vector<64x128xf32>
    %26 = arith.cmpf ogt, %24, %25 : vector<64x128xf32>
    %cst_22 = arith.constant 0.00999999977 : f32
    %27 = vector.broadcast %cst_22 : f32 to vector<64x128xf32>
    %28 = arith.mulf %27, %24 : vector<64x128xf32>
    %29 = arith.select %26, %24, %28 : vector<64x128xi1>, vector<64x128xf32>
    %30 = vector.shape_cast %29 : vector<64x128xf32> to vector<8x8x128xf32>
    %c1 = arith.constant 1 : index
    %c1_23 = arith.constant 1 : index
    %c0_24 = arith.constant 0 : index
    %31 = vector.load %arg12[%c1, %c1_23, %c0_24] : memref<10x10x128xf32, #tpu.memory_space<vmem>>, vector<8x8x128xf32>
    tpu.vector_store %arg12[%c1, %c1_23, %c0_24], %30 {strides = array<i32>} : memref<10x10x128xf32, #tpu.memory_space<vmem>>, vector<8x8x128xf32>,
    %cst_25 = arith.constant 0.000000e+00 : f32
    %32 = vector.broadcast %cst_25 : f32 to vector<8x8x128xf32>
    %c0_26 = arith.constant 0 : index
    %c0_27 = arith.constant 0 : index
    %c0_28 = arith.constant 0 : index
    %33 = vector.load %arg12[%c0_26, %c0_27, %c0_28] : memref<10x10x128xf32, #tpu.memory_space<vmem>>, vector<8x8x128xf32>
    %c0_29 = arith.constant 0 : index
    %c0_30 = arith.constant 0 : index
    %c0_31 = arith.constant 0 : index
    %34 = vector.load %arg6[%c0_29, %c0_30, %c0_31] : memref<3x3x128xf32, #tpu.memory_space<vmem>>, vector<1x1x128xf32>
    %35 = vector.broadcast %34 : vector<1x1x128xf32> to vector<8x8x128xf32>
    %36 = arith.mulf %33, %35 : vector<8x8x128xf32>
    %37 = arith.addf %32, %36 : vector<8x8x128xf32>
    %c0_32 = arith.constant 0 : index
    %c1_33 = arith.constant 1 : index
    %c0_34 = arith.constant 0 : index
    %38 = vector.load %arg12[%c0_32, %c1_33, %c0_34] : memref<10x10x128xf32, #tpu.memory_space<vmem>>, vector<8x8x128xf32>
    %c0_35 = arith.constant 0 : index
    %c1_36 = arith.constant 1 : index
    %c0_37 = arith.constant 0 : index
    %39 = vector.load %arg6[%c0_35, %c1_36, %c0_37] : memref<3x3x128xf32, #tpu.memory_space<vmem>>, vector<1x1x128xf32>
    %40 = vector.broadcast %39 : vector<1x1x128xf32> to vector<8x8x128xf32>
    %41 = arith.mulf %38, %40 : vector<8x8x128xf32>
    %42 = arith.addf %37, %41 : vector<8x8x128xf32>
    %c0_38 = arith.constant 0 : index
    %c2 = arith.constant 2 : index
    %c0_39 = arith.constant 0 : index
    %43 = vector.load %arg12[%c0_38, %c2, %c0_39] : memref<10x10x128xf32, #tpu.memory_space<vmem>>, vector<8x8x128xf32>
    %c0_40 = arith.constant 0 : index
    %c2_41 = arith.constant 2 : index
    %c0_42 = arith.constant 0 : index
    %44 = vector.load %arg6[%c0_40, %c2_41, %c0_42] : memref<3x3x128xf32, #tpu.memory_space<vmem>>, vector<1x1x128xf32>
    %45 = vector.broadcast %44 : vector<1x1x128xf32> to vector<8x8x128xf32>
    %46 = arith.mulf %43, %45 : vector<8x8x128xf32>
    %47 = arith.addf %42, %46 : vector<8x8x128xf32>
    %c1_43 = arith.constant 1 : index
    %c0_44 = arith.constant 0 : index
    %c0_45 = arith.constant 0 : index
    %48 = vector.load %arg12[%c1_43, %c0_44, %c0_45] : memref<10x10x128xf32, #tpu.memory_space<vmem>>, vector<8x8x128xf32>
    %c1_46 = arith.constant 1 : index
    %c0_47 = arith.constant 0 : index
    %c0_48 = arith.constant 0 : index
    %49 = vector.load %arg6[%c1_46, %c0_47, %c0_48] : memref<3x3x128xf32, #tpu.memory_space<vmem>>, vector<1x1x128xf32>
    %50 = vector.broadcast %49 : vector<1x1x128xf32> to vector<8x8x128xf32>
    %51 = arith.mulf %48, %50 : vector<8x8x128xf32>
    %52 = arith.addf %47, %51 : vector<8x8x128xf32>
    %c1_49 = arith.constant 1 : index
    %c1_50 = arith.constant 1 : index
    %c0_51 = arith.constant 0 : index
    %53 = vector.load %arg12[%c1_49, %c1_50, %c0_51] : memref<10x10x128xf32, #tpu.memory_space<vmem>>, vector<8x8x128xf32>
    %c1_52 = arith.constant 1 : index
    %c1_53 = arith.constant 1 : index
    %c0_54 = arith.constant 0 : index
    %54 = vector.load %arg6[%c1_52, %c1_53, %c0_54] : memref<3x3x128xf32, #tpu.memory_space<vmem>>, vector<1x1x128xf32>
    %55 = vector.broadcast %54 : vector<1x1x128xf32> to vector<8x8x128xf32>
    %56 = arith.mulf %53, %55 : vector<8x8x128xf32>
    %57 = arith.addf %52, %56 : vector<8x8x128xf32>
    %c1_55 = arith.constant 1 : index
    %c2_56 = arith.constant 2 : index
    %c0_57 = arith.constant 0 : index
    %58 = vector.load %arg12[%c1_55, %c2_56, %c0_57] : memref<10x10x128xf32, #tpu.memory_space<vmem>>, vector<8x8x128xf32>
    %c1_58 = arith.constant 1 : index
    %c2_59 = arith.constant 2 : index
    %c0_60 = arith.constant 0 : index
    %59 = vector.load %arg6[%c1_58, %c2_59, %c0_60] : memref<3x3x128xf32, #tpu.memory_space<vmem>>, vector<1x1x128xf32>
    %60 = vector.broadcast %59 : vector<1x1x128xf32> to vector<8x8x128xf32>
    %61 = arith.mulf %58, %60 : vector<8x8x128xf32>
    %62 = arith.addf %57, %61 : vector<8x8x128xf32>
    %c2_61 = arith.constant 2 : index
    %c0_62 = arith.constant 0 : index
    %c0_63 = arith.constant 0 : index
    %63 = vector.load %arg12[%c2_61, %c0_62, %c0_63] : memref<10x10x128xf32, #tpu.memory_space<vmem>>, vector<8x8x128xf32>
    %c2_64 = arith.constant 2 : index
    %c0_65 = arith.constant 0 : index
    %c0_66 = arith.constant 0 : index
    %64 = vector.load %arg6[%c2_64, %c0_65, %c0_66] : memref<3x3x128xf32, #tpu.memory_space<vmem>>, vector<1x1x128xf32>
    %65 = vector.broadcast %64 : vector<1x1x128xf32> to vector<8x8x128xf32>
    %66 = arith.mulf %63, %65 : vector<8x8x128xf32>
    %67 = arith.addf %62, %66 : vector<8x8x128xf32>
    %c2_67 = arith.constant 2 : index
    %c1_68 = arith.constant 1 : index
    %c0_69 = arith.constant 0 : index
    %68 = vector.load %arg12[%c2_67, %c1_68, %c0_69] : memref<10x10x128xf32, #tpu.memory_space<vmem>>, vector<8x8x128xf32>
    %c2_70 = arith.constant 2 : index
    %c1_71 = arith.constant 1 : index
    %c0_72 = arith.constant 0 : index
    %69 = vector.load %arg6[%c2_70, %c1_71, %c0_72] : memref<3x3x128xf32, #tpu.memory_space<vmem>>, vector<1x1x128xf32>
    %70 = vector.broadcast %69 : vector<1x1x128xf32> to vector<8x8x128xf32>
    %71 = arith.mulf %68, %70 : vector<8x8x128xf32>
    %72 = arith.addf %67, %71 : vector<8x8x128xf32>
    %c2_73 = arith.constant 2 : index
    %c2_74 = arith.constant 2 : index
    %c0_75 = arith.constant 0 : index
    %73 = vector.load %arg12[%c2_73, %c2_74, %c0_75] : memref<10x10x128xf32, #tpu.memory_space<vmem>>, vector<8x8x128xf32>
    %c2_76 = arith.constant 2 : index
    %c2_77 = arith.constant 2 : index
    %c0_78 = arith.constant 0 : index
    %74 = vector.load %arg6[%c2_76, %c2_77, %c0_78] : memref<3x3x128xf32, #tpu.memory_space<vmem>>, vector<1x1x128xf32>
    %75 = vector.broadcast %74 : vector<1x1x128xf32> to vector<8x8x128xf32>
    %76 = arith.mulf %73, %75 : vector<8x8x128xf32>
    %77 = arith.addf %72, %76 : vector<8x8x128xf32>
    %c0_79 = arith.constant 0 : index
    %c0_80 = arith.constant 0 : index
    %c0_81 = arith.constant 0 : index
    %78 = vector.load %arg7[%c0_79, %c0_80, %c0_81] : memref<1x1x128xf32, #tpu.memory_space<vmem>>, vector<1x1x128xf32>
    %79 = vector.broadcast %78 : vector<1x1x128xf32> to vector<8x8x128xf32>
    %80 = arith.addf %77, %79 : vector<8x8x128xf32>
    %cst_82 = arith.constant 0.000000e+00 : f32
    %81 = vector.broadcast %cst_82 : f32 to vector<8x8x128xf32>
    %82 = arith.cmpf ogt, %80, %81 : vector<8x8x128xf32>
    %cst_83 = arith.constant 0.00999999977 : f32
    %83 = vector.broadcast %cst_83 : f32 to vector<8x8x128xf32>
    %84 = arith.mulf %83, %80 : vector<8x8x128xf32>
    %85 = arith.select %82, %80, %84 : vector<8x8x128xi1>, vector<8x8x128xf32>
    %86 = vector.shape_cast %85 : vector<8x8x128xf32> to vector<64x128xf32>
    %c0_84 = arith.constant 0 : index
    %c0_85 = arith.constant 0 : index
    %87 = vector.load %arg8[%c0_84, %c0_85] : memref<128x128xf32, #tpu.memory_space<vmem>>, vector<128x128xf32>
    %cst_86 = arith.constant dense<0.000000e+00> : vector<64x128xf32>
    %88 = tpu.matmul %86, %87, %cst_86 {dimension_numbers = #tpu.dot_dimension_numbers<[1], [0], [0], [1], [0, 0, 1, 1], [], []>} : vector<64x128xf32>, vector<128x128xf32>, vector<64x128xf32> -> vector<64x128xf32>
    %cst_87 = arith.constant 0.000000e+00 : f32
    %89 = vector.broadcast %cst_87 : f32 to vector<64x128xf32>
    %90 = arith.cmpf ogt, %88, %89 : vector<64x128xf32>
    %cst_88 = arith.constant 0.00999999977 : f32
    %91 = vector.broadcast %cst_88 : f32 to vector<64x128xf32>
    %92 = arith.mulf %91, %88 : vector<64x128xf32>
    %93 = arith.select %90, %88, %92 : vector<64x128xi1>, vector<64x128xf32>
    %94 = vector.shape_cast %93 : vector<64x128xf32> to vector<8x8x128xf32>
    %c1_89 = arith.constant 1 : index
    %c1_90 = arith.constant 1 : index
    %c0_91 = arith.constant 0 : index
    %95 = vector.load %arg12[%c1_89, %c1_90, %c0_91] : memref<10x10x128xf32, #tpu.memory_space<vmem>>, vector<8x8x128xf32>
    tpu.vector_store %arg12[%c1_89, %c1_90, %c0_91], %94 {strides = array<i32>} : memref<10x10x128xf32, #tpu.memory_space<vmem>>, vector<8x8x128xf32>,
    %cst_92 = arith.constant 0.000000e+00 : f32
    %96 = vector.broadcast %cst_92 : f32 to vector<8x8x128xf32>
    %c0_93 = arith.constant 0 : index
    %c0_94 = arith.constant 0 : index
    %c0_95 = arith.constant 0 : index
    %97 = vector.load %arg12[%c0_93, %c0_94, %c0_95] : memref<10x10x128xf32, #tpu.memory_space<vmem>>, vector<8x8x128xf32>
    %c0_96 = arith.constant 0 : index
    %c0_97 = arith.constant 0 : index
    %c0_98 = arith.constant 0 : index
    %98 = vector.load %arg9[%c0_96, %c0_97, %c0_98] : memref<3x3x128xf32, #tpu.memory_space<vmem>>, vector<1x1x128xf32>
    %99 = vector.broadcast %98 : vector<1x1x128xf32> to vector<8x8x128xf32>
    %100 = arith.mulf %97, %99 : vector<8x8x128xf32>
    %101 = arith.addf %96, %100 : vector<8x8x128xf32>
    %c0_99 = arith.constant 0 : index
    %c1_100 = arith.constant 1 : index
    %c0_101 = arith.constant 0 : index
    %102 = vector.load %arg12[%c0_99, %c1_100, %c0_101] : memref<10x10x128xf32, #tpu.memory_space<vmem>>, vector<8x8x128xf32>
    %c0_102 = arith.constant 0 : index
    %c1_103 = arith.constant 1 : index
    %c0_104 = arith.constant 0 : index
    %103 = vector.load %arg9[%c0_102, %c1_103, %c0_104] : memref<3x3x128xf32, #tpu.memory_space<vmem>>, vector<1x1x128xf32>
    %104 = vector.broadcast %103 : vector<1x1x128xf32> to vector<8x8x128xf32>
    %105 = arith.mulf %102, %104 : vector<8x8x128xf32>
    %106 = arith.addf %101, %105 : vector<8x8x128xf32>
    %c0_105 = arith.constant 0 : index
    %c2_106 = arith.constant 2 : index
    %c0_107 = arith.constant 0 : index
    %107 = vector.load %arg12[%c0_105, %c2_106, %c0_107] : memref<10x10x128xf32, #tpu.memory_space<vmem>>, vector<8x8x128xf32>
    %c0_108 = arith.constant 0 : index
    %c2_109 = arith.constant 2 : index
    %c0_110 = arith.constant 0 : index
    %108 = vector.load %arg9[%c0_108, %c2_109, %c0_110] : memref<3x3x128xf32, #tpu.memory_space<vmem>>, vector<1x1x128xf32>
    %109 = vector.broadcast %108 : vector<1x1x128xf32> to vector<8x8x128xf32>
    %110 = arith.mulf %107, %109 : vector<8x8x128xf32>
    %111 = arith.addf %106, %110 : vector<8x8x128xf32>
    %c1_111 = arith.constant 1 : index
    %c0_112 = arith.constant 0 : index
    %c0_113 = arith.constant 0 : index
    %112 = vector.load %arg12[%c1_111, %c0_112, %c0_113] : memref<10x10x128xf32, #tpu.memory_space<vmem>>, vector<8x8x128xf32>
    %c1_114 = arith.constant 1 : index
    %c0_115 = arith.constant 0 : index
    %c0_116 = arith.constant 0 : index
    %113 = vector.load %arg9[%c1_114, %c0_115, %c0_116] : memref<3x3x128xf32, #tpu.memory_space<vmem>>, vector<1x1x128xf32>
    %114 = vector.broadcast %113 : vector<1x1x128xf32> to vector<8x8x128xf32>
    %115 = arith.mulf %112, %114 : vector<8x8x128xf32>
    %116 = arith.addf %111, %115 : vector<8x8x128xf32>
    %c1_117 = arith.constant 1 : index
    %c1_118 = arith.constant 1 : index
    %c0_119 = arith.constant 0 : index
    %117 = vector.load %arg12[%c1_117, %c1_118, %c0_119] : memref<10x10x128xf32, #tpu.memory_space<vmem>>, vector<8x8x128xf32>
    %c1_120 = arith.constant 1 : index
    %c1_121 = arith.constant 1 : index
    %c0_122 = arith.constant 0 : index
    %118 = vector.load %arg9[%c1_120, %c1_121, %c0_122] : memref<3x3x128xf32, #tpu.memory_space<vmem>>, vector<1x1x128xf32>
    %119 = vector.broadcast %118 : vector<1x1x128xf32> to vector<8x8x128xf32>
    %120 = arith.mulf %117, %119 : vector<8x8x128xf32>
    %121 = arith.addf %116, %120 : vector<8x8x128xf32>
    %c1_123 = arith.constant 1 : index
    %c2_124 = arith.constant 2 : index
    %c0_125 = arith.constant 0 : index
    %122 = vector.load %arg12[%c1_123, %c2_124, %c0_125] : memref<10x10x128xf32, #tpu.memory_space<vmem>>, vector<8x8x128xf32>
    %c1_126 = arith.constant 1 : index
    %c2_127 = arith.constant 2 : index
    %c0_128 = arith.constant 0 : index
    %123 = vector.load %arg9[%c1_126, %c2_127, %c0_128] : memref<3x3x128xf32, #tpu.memory_space<vmem>>, vector<1x1x128xf32>
    %124 = vector.broadcast %123 : vector<1x1x128xf32> to vector<8x8x128xf32>
    %125 = arith.mulf %122, %124 : vector<8x8x128xf32>
    %126 = arith.addf %121, %125 : vector<8x8x128xf32>
    %c2_129 = arith.constant 2 : index
    %c0_130 = arith.constant 0 : index
    %c0_131 = arith.constant 0 : index
    %127 = vector.load %arg12[%c2_129, %c0_130, %c0_131] : memref<10x10x128xf32, #tpu.memory_space<vmem>>, vector<8x8x128xf32>
    %c2_132 = arith.constant 2 : index
    %c0_133 = arith.constant 0 : index
    %c0_134 = arith.constant 0 : index
    %128 = vector.load %arg9[%c2_132, %c0_133, %c0_134] : memref<3x3x128xf32, #tpu.memory_space<vmem>>, vector<1x1x128xf32>
    %129 = vector.broadcast %128 : vector<1x1x128xf32> to vector<8x8x128xf32>
    %130 = arith.mulf %127, %129 : vector<8x8x128xf32>
    %131 = arith.addf %126, %130 : vector<8x8x128xf32>
    %c2_135 = arith.constant 2 : index
    %c1_136 = arith.constant 1 : index
    %c0_137 = arith.constant 0 : index
    %132 = vector.load %arg12[%c2_135, %c1_136, %c0_137] : memref<10x10x128xf32, #tpu.memory_space<vmem>>, vector<8x8x128xf32>
    %c2_138 = arith.constant 2 : index
    %c1_139 = arith.constant 1 : index
    %c0_140 = arith.constant 0 : index
    %133 = vector.load %arg9[%c2_138, %c1_139, %c0_140] : memref<3x3x128xf32, #tpu.memory_space<vmem>>, vector<1x1x128xf32>
    %134 = vector.broadcast %133 : vector<1x1x128xf32> to vector<8x8x128xf32>
    %135 = arith.mulf %132, %134 : vector<8x8x128xf32>
    %136 = arith.addf %131, %135 : vector<8x8x128xf32>
    %c2_141 = arith.constant 2 : index
    %c2_142 = arith.constant 2 : index
    %c0_143 = arith.constant 0 : index
    %137 = vector.load %arg12[%c2_141, %c2_142, %c0_143] : memref<10x10x128xf32, #tpu.memory_space<vmem>>, vector<8x8x128xf32>
    %c2_144 = arith.constant 2 : index
    %c2_145 = arith.constant 2 : index
    %c0_146 = arith.constant 0 : index
    %138 = vector.load %arg9[%c2_144, %c2_145, %c0_146] : memref<3x3x128xf32, #tpu.memory_space<vmem>>, vector<1x1x128xf32>
    %139 = vector.broadcast %138 : vector<1x1x128xf32> to vector<8x8x128xf32>
    %140 = arith.mulf %137, %139 : vector<8x8x128xf32>
    %141 = arith.addf %136, %140 : vector<8x8x128xf32>
    %c0_147 = arith.constant 0 : index
    %c0_148 = arith.constant 0 : index
    %c0_149 = arith.constant 0 : index
    %142 = vector.load %arg10[%c0_147, %c0_148, %c0_149] : memref<1x1x128xf32, #tpu.memory_space<vmem>>, vector<1x1x128xf32>
    %143 = vector.broadcast %142 : vector<1x1x128xf32> to vector<8x8x128xf32>
    %144 = arith.addf %141, %143 : vector<8x8x128xf32>
    %cst_150 = arith.constant 0.000000e+00 : f32
    %145 = vector.broadcast %cst_150 : f32 to vector<8x8x128xf32>
    %146 = arith.cmpf ogt, %144, %145 : vector<8x8x128xf32>
    %cst_151 = arith.constant 0.00999999977 : f32
    %147 = vector.broadcast %cst_151 : f32 to vector<8x8x128xf32>
    %148 = arith.mulf %147, %144 : vector<8x8x128xf32>
    %149 = arith.select %146, %144, %148 : vector<8x8x128xi1>, vector<8x8x128xf32>
    %150 = vector.shape_cast %149 : vector<8x8x128xf32> to vector<64x128xf32>
    %151 = vector.extract_strided_slice %150 {offsets = [0, 0], sizes = [64, 32], strides = [1, 1]} : vector<64x128xf32> to vector<64x32xf32>
    %c0_152 = arith.constant 0 : index
    %c0_153 = arith.constant 0 : index
    %152 = vector.load %arg11[%c0_152, %c0_153] : memref<64x32xf32, #tpu.memory_space<vmem>>, vector<64x32xf32>
    tpu.vector_store %arg11[%c0_152, %c0_153], %151 {strides = array<i32>} : memref<64x32xf32, #tpu.memory_space<vmem>>, vector<64x32xf32>,
    return
  }
}

</mosaic_0001>

<bundles_post_ra>
// kernel: cnnnn_forward.1
= control target key start
LH: loop header
LB: loop body
LE: loop exit
PB: predicated region body
PF: predicated region fallthrough
CT: control target
= control target key end

     0   :  { %vm55_vm0 = vcmask 130048   ;;  %s2318_s1 = inlined_call_operand.vmem [shape: f32[16,128], index: 1, kind: input, shape index: {}]   ;;  %s2319_s0 = inlined_call_operand.vmem [shape: f32[64,16], index: 0, kind: input, shape index: {}]   ;;  %s2320_s3 = inlined_call_operand.vmem [shape: f32[128,128], index: 3, kind: input, shape index: {}]   ;;  %s2321_s5 = inlined_call_operand.vmem [shape: f32[128,128], index: 5, kind: input, shape index: {}]   ;;  %s2322_s2 = inlined_call_operand.vmem [shape: f32[1,128], index: 2, kind: input, shape index: {}]   ;;  %s2323_s4 = inlined_call_operand.vmem [shape: f32[1,128], index: 4, kind: input, shape index: {}]   ;;  %s2324_s8 = inlined_call_operand.vmem [shape: f32[128,128], index: 8, kind: input, shape index: {}]   ;;  %s2325_s6 = inlined_call_operand.vmem [shape: f32[3,3,128], index: 6, kind: input, shape index: {}]   ;;  %s2326_s7 = inlined_call_operand.vmem [shape: f32[1,1,128], index: 7, kind: input, shape index: {}]   ;;  %s2327_s9 = inlined_call_operand.vmem [shape: f32[3,3,128], index: 9, kind: input, shape index: {}]   ;;  %s2328_s10 = inlined_call_operand.vmem [shape: f32[1,1,128], index: 10, kind: input, shape index: {}]   ;;  %s2329_s11 = inlined_call_operand.vmem [shape: f32[64,32], index: 11, kind: output, shape index: {}]  }
   0x1   :  { %v46_v0 = vld [vmem:[%s2318_s1] sm:$0xff]  ;;  %v47_v1 = vld [vmem:[%s2318_s1 + $0x8] sm:$0xff]  ;;  %v211_v8 = vld [vmem:[%s2320_s3 + $0x10] sm:$0xff] }
   0x2   :  { %v38_v2 = vld [vmem:[%s2319_s0] sm:$0xff]  ;;  %v1578_v3 = vpack.c.bf16 %v47_v1, %v46_v0  ;;  %v210_v5 = vld [vmem:[%s2320_s3 + $0x8] sm:$0xff]  ;;  %v212_v9 = vld [vmem:[%s2320_s3 + $0x18] sm:$0xff] }
   0x3   :  { %1434 = vmatprep.mubr.msk.f32.mxu0 %vm55_vm0, %v38_v2  ;;  %v209_v4 = vld [vmem:[%s2320_s3] sm:$0xff]  ;;  %v39_v6 = vld [vmem:[%s2319_s0 + $0x8] sm:$0xff]  ;;  %v40_v10 = vld [vmem:[%s2319_s0 + $0x10] sm:$0xff]  ;;  %v1586_v11 = vpack.c.bf16 %v212_v9, %v211_v8 }
   0x4   :  { %1579 = vmatprep.subr.bf16.mxu0 %v1578_v3  ;;  %v1582_v7 = vpack.c.bf16 %v210_v5, %v209_v4  ;;  %v213_v12 = vld [vmem:[%s2320_s3 + $0x20] sm:$0xff]  ;;  %v214_v13 = vld [vmem:[%s2320_s3 + $0x28] sm:$0xff]  ;;  %v41_v14 = vld [vmem:[%s2319_s0 + $0x18] sm:$0xff] }
   0x5   :  { %1581 = vmatpush3.bf16.msra.mxu0 %v1578_v3  ;;  %v1590_v15 = vpack.c.bf16 %v214_v13, %v213_v12  ;;  %v42_v16 = vld [vmem:[%s2319_s0 + $0x20] sm:$0xff]  ;;  %v215_v17 = vld [vmem:[%s2320_s3 + $0x30] sm:$0xff]  ;;  %v216_v18 = vld [vmem:[%s2320_s3 + $0x38] sm:$0xff] }
   0x6   :  { %1583 = vmatprep.subr.bf16.mxu1 %v1582_v7  ;;  %v43_v19 = vld [vmem:[%s2319_s0 + $0x28] sm:$0xff]  ;;  %v1594_v20 = vpack.c.bf16 %v216_v18, %v215_v17  ;;  %v44_v21 = vld [vmem:[%s2319_s0 + $0x30] sm:$0xff]  ;;  %v217_v22 = vld [vmem:[%s2320_s3 + $0x40] sm:$0xff] }
   0x7   :  { %1585 = vmatpush3.bf16.msra.mxu1 %v1582_v7  ;;  %v218_v23 = vld [vmem:[%s2320_s3 + $0x48] sm:$0xff]  ;;  %v45_v24 = vld [vmem:[%s2319_s0 + $0x38] sm:$0xff]  ;;  %v219_v26 = vld [vmem:[%s2320_s3 + $0x50] sm:$0xff] }
   0x8   :  { %1435 = vmatmul.mubr.msk.f32.vlgmr.msra.gmra.mrb[0].mxu0 %vm55_vm0, %v39_v6  ;;  %1587 = vmatprep.subr.bf16.mxu1 %v1586_v11  ;;  %v1598_v25 = vpack.c.bf16 %v218_v23, %v217_v22  ;;  %v220_v27 = vld [vmem:[%s2320_s3 + $0x58] sm:$0xff]  ;;  %v221_v29 = vld [vmem:[%s2320_s3 + $0x60] sm:$0xff]  ;;  %v222_v30 = vld [vmem:[%s2320_s3 + $0x68] sm:$0xff] }
   0x9   :  { %1437 = vmatprep.mubr.msk.f32.mxu0 %vm55_vm0, %v40_v10  ;;  %v1602_v28 = vpack.c.bf16 %v220_v27, %v219_v26  ;;  %v1606_v31 = vpack.c.bf16 %v222_v30, %v221_v29  ;;  %v223_v32 = vld [vmem:[%s2320_s3 + $0x70] sm:$0xff]  ;;  %v224_v33 = vld [vmem:[%s2320_s3 + $0x78] sm:$0xff]  ;;  %v381_v35 = vld [vmem:[%s2321_s5] sm:$0xff] }
   0xa   :  { %v1610_v34 = vpack.c.bf16 %v224_v33, %v223_v32  ;;  %v382_v36 = vld [vmem:[%s2321_s5 + $0x8] sm:$0xff]  ;;  %v383_v37 = vld [vmem:[%s2321_s5 + $0x10] sm:$0xff]  ;;  %v384_v39 = vld [vmem:[%s2321_s5 + $0x18] sm:$0xff] }
   0xb   :  { %1589 = vmatpush3.bf16.msra.mxu1 %v1586_v11  ;;  %v1614_v38 = vpack.c.bf16 %v382_v36, %v381_v35  ;;  %v1618_v40 = vpack.c.bf16 %v384_v39, %v383_v37  ;;  %v385_v41 = vld [vmem:[%s2321_s5 + $0x20] sm:$0xff]  ;;  %v386_v42 = vld [vmem:[%s2321_s5 + $0x28] sm:$0xff]  ;;  %v387_v44 = vld [vmem:[%s2321_s5 + $0x30] sm:$0xff] }
   0xc   :  { %1438 = vmatmul.mubr.msk.f32.gmra.mrb[2].mxu0 %vm55_vm0, %v41_v14  ;;  %1591 = vmatprep.subr.bf16.mxu1 %v1590_v15  ;;  %v1622_v43 = vpack.c.bf16 %v386_v42, %v385_v41  ;;  %v388_v45 = vld [vmem:[%s2321_s5 + $0x38] sm:$0xff]  ;;  %v389_v47 = vld [vmem:[%s2321_s5 + $0x40] sm:$0xff]  ;;  %v390_v48 = vld [vmem:[%s2321_s5 + $0x48] sm:$0xff] }
   0xd   :  { %1440 = vmatprep.mubr.msk.f32.mxu0 %vm55_vm0, %v42_v16  ;;  %1615 = vmatprep.subr.bf16.mxu0 %v1614_v38  ;;  %v1626_v46 = vpack.c.bf16 %v388_v45, %v387_v44  ;;  %v1630_v49 = vpack.c.bf16 %v390_v48, %v389_v47  ;;  %v391_v50 = vld [vmem:[%s2321_s5 + $0x50] sm:$0xff]  ;;  %v392_v51 = vld [vmem:[%s2321_s5 + $0x58] sm:$0xff]  ;;  %v1306_v53 = vld [vmem:[%s2322_s2] ss:$0 sm:$0xff] }
   0xe   :  { %1617 = vmatpush3.bf16.msra.mxu0 %v1614_v38  ;;  %v1634_v52 = vpack.c.bf16 %v392_v51, %v391_v50  ;;  %v393_v22 = vld [vmem:[%s2321_s5 + $0x60] sm:$0xff]  ;;  %v394_v23 = vld [vmem:[%s2321_s5 + $0x68] sm:$0xff]  ;;  %v396_v26 = vld [vmem:[%s2321_s5 + $0x78] sm:$0xff] }
   0xf   :  { %1593 = vmatpush3.bf16.msra.mxu1 %v1590_v15  ;;  %1619 = vmatprep.subr.bf16.mxu0 %v1618_v40  ;;  %v1315_v29 = vld [vmem:[%s2323_s4] ss:$0 sm:$0xff] }
  0x10   :  { %1441 = vmatmul.mubr.msk.f32.gmra.mrb[4].mxu0 %vm55_vm0, %v43_v19  ;;  %1595 = vmatprep.subr.bf16.mxu1 %v1594_v20 }
  0x11   :  { %1443 = vmatprep.mubr.msk.f32.mxu0 %vm55_vm0, %v44_v21 }
  0x12   :  { %1621 = vmatpush3.bf16.msra.mxu0 %v1618_v40 }
  0x13   :  { %1597 = vmatpush3.bf16.msra.mxu1 %v1594_v20  ;;  %1623 = vmatprep.subr.bf16.mxu0 %v1622_v43 }
  0x14   :  { %1444 = vmatmul.mubr.msk.f32.gmra.mrb[6].mxu0 %vm55_vm0, %v45_v24  ;;  %1599 = vmatprep.subr.bf16.mxu1 %v1598_v25  ;;  %v1638_v24 = vpack.c.bf16 %v394_v23, %v393_v22  ;;  %v1948_v22 = vld [vmem:[%s2325_s6] ss:$0 sm:$0xff] }
  0x16   :  { %1625 = vmatpush3.bf16.msra.mxu0 %v1622_v43 }
  0x17   :  { %1601 = vmatpush3.bf16.msra.mxu1 %v1598_v25  ;;  %1627 = vmatprep.subr.bf16.mxu0 %v1626_v46  ;;  %v395_v25 = vld [vmem:[%s2321_s5 + $0x70] sm:$0xff] }
  0x18   :  { %1603 = vmatprep.subr.bf16.mxu1 %v1602_v28  ;;  %v1642_v27 = vpack.c.bf16 %v396_v26, %v395_v25  ;;  %v548_v26 = vmul.f32 0.0, %v1948_v22 }
  0x1a   :  { %1629 = vmatpush3.bf16.msra.mxu0 %v1626_v46 }
  0x1b   :  { %1605 = vmatpush3.bf16.msra.mxu1 %v1602_v28  ;;  %1631 = vmatprep.subr.bf16.mxu0 %v1630_v49  ;;  %v1696_v28 = vmov 0.0  }
  0x1c   :  { %1607 = vmatprep.subr.bf16.mxu1 %v1606_v31  ;;  %365 = vst [vmem:[#allocation2 + $0x20] sm:$0xff] %v1696_v28  ;;  %366 = vst [vmem:[#allocation2 + $0x28] sm:$0x3] %v1696_v28 }
  0x1d   :  { %361 = vst [vmem:[#allocation2] sm:$0xff] %v1696_v28  ;;  %362 = vst [vmem:[#allocation2 + $0x8] sm:$0x3] %v1696_v28 }
  0x1e   :  { %1633 = vmatpush3.bf16.msra.mxu0 %v1630_v49  ;;  %363 = vst [vmem:[#allocation2 + $0x10] sm:$0xff] %v1696_v28  ;;  %364 = vst [vmem:[#allocation2 + $0x18] sm:$0x3] %v1696_v28 }
  0x1f   :  { %1609 = vmatpush3.bf16.msra.mxu1 %v1606_v31  ;;  %1635 = vmatprep.subr.bf16.mxu0 %v1634_v52  ;;  %367 = vst [vmem:[#allocation2 + $0x30] sm:$0xff] %v1696_v28  ;;  %368 = vst [vmem:[#allocation2 + $0x38] sm:$0x3] %v1696_v28 }
  0x20   :  { %1611 = vmatprep.subr.bf16.mxu1 %v1610_v34  ;;  %369 = vst [vmem:[#allocation2 + $0x40] sm:$0xff] %v1696_v28  ;;  %370 = vst [vmem:[#allocation2 + $0x48] sm:$0x3] %v1696_v28 }
  0x21   :  { %371 = vst [vmem:[#allocation2 + $0x50] sm:$0xff] %v1696_v28  ;;  %372 = vst [vmem:[#allocation2 + $0x58] sm:$0x3] %v1696_v28 }
  0x22   :  { %1637 = vmatpush3.bf16.msra.mxu0 %v1634_v52  ;;  %373 = vst [vmem:[#allocation2 + $0x60] sm:$0xff] %v1696_v28  ;;  %374 = vst [vmem:[#allocation2 + $0x68] sm:$0x3] %v1696_v28 }
  0x23   :  { %1613 = vmatpush3.bf16.msra.mxu1 %v1610_v34  ;;  %1639 = vmatprep.subr.bf16.mxu0 %v1638_v24  ;;  %375 = vst [vmem:[#allocation2 + $0x70] sm:$0xff] %v1696_v28  ;;  %376 = vst [vmem:[#allocation2 + $0x78] sm:$0x3] %v1696_v28 }
  0x24   :  { %377 = vst [vmem:[#allocation2 + $0x80] sm:$0xff] %v1696_v28  ;;  %378 = vst [vmem:[#allocation2 + $0x88] sm:$0x3] %v1696_v28  ;;  %v1950_v23 = vld [vmem:[#allocation2 + $0x1] sm:$0xff] }
  0x25   :  { %379 = vst [vmem:[#allocation2 + $0x90] sm:$0xff] %v1696_v28  ;;  %380 = vst [vmem:[#allocation2 + $0x98] sm:$0x3] %v1696_v28  ;;  %v1960_v28 = vld [vmem:[#allocation2 + $0x2] sm:$0xff] }
  0x26   :  { %1641 = vmatpush3.bf16.msra.mxu0 %v1638_v24  ;;  %v1955_v24 = vld [vmem:[%s2325_s6 + $0x1] ss:$0 sm:$0xff] }
  0x27   :  { %1643 = vmatprep.subr.bf16.mxu0 %v1642_v27 }
  0x2a   :  { %1645 = vmatpush3.bf16.msra.mxu0 %v1642_v27  ;;  %v577_v27 = vmul.f32 %v1955_v24, %v1950_v23 }
  0xdb   :  { %v1436_v54 = vpop.f32.mrb[0].mxu0 }
  0xdc   :  { %v152_v55 = vadd.f32 %v1436_v54, %v1306_v53  ;;  %v146_v56 = vpop.f32.mrb[1].mxu0 }
  0xdd   :  { %v147_v57 = vadd.f32 %v1306_v53, %v146_v56 }
  0xde   :  { %v194_v58 = vmul.f32 0.01, %v152_v55  ;;  %vm186_vm2 = vcmp.gt.f32.partialorder %v152_v55, 0.0 }
  0xdf   :  { %v1439_v59 = vpop.f32.mrb[2].mxu0  ;;  %vm185_vm1 = vcmp.gt.f32.partialorder %v147_v57, 0.0  ;;  %v193_v60 = vmul.f32 0.01, %v147_v57 }
  0xe0   :  { %v162_v61 = vadd.f32 %v1439_v59, %v1306_v53  ;;  %v156_v62 = vpop.f32.mrb[3].mxu0  ;;  %v202_v2 = vsel %vm186_vm2, %v152_v55, %v194_v58 }
  0xe1   :  { %v157_v63 = vadd.f32 %v1306_v53, %v156_v62  ;;  %v201_v0 = vsel %vm185_vm1, %v147_v57, %v193_v60  ;;  %v838_v62 = vld [vmem:[%s2324_s8] sm:$0xff] }
  0xe2   :  { %v196_v1 = vmul.f32 0.01, %v162_v61  ;;  %1478 = vmatprep.mubr.f32.mxu1 %v201_v0  ;;  %vm188_vm4 = vcmp.gt.f32.partialorder %v162_v61, 0.0 }
  0xe3   :  { %v195_v3 = vmul.f32 0.01, %v157_v63  ;;  %v1442_v4 = vpop.f32.mrb[4].mxu0  ;;  %1479 = vmatmul.mubr.f32.vlgmr.msra.gmra.mrb[0].mxu1 %v202_v2  ;;  %vm187_vm3 = vcmp.gt.f32.partialorder %v157_v63, 0.0  ;;  %v841_v2 = vld [vmem:[%s2324_s8 + $0x18] sm:$0xff] }
  0xe4   :  { %v172_v5 = vadd.f32 %v1442_v4, %v1306_v53  ;;  %v166_v6 = vpop.f32.mrb[5].mxu0  ;;  %v204_v10 = vsel %vm188_vm4, %v162_v61, %v196_v1  ;;  %v840_v1 = vld [vmem:[%s2324_s8 + $0x10] sm:$0xff]  ;;  %v842_v4 = vld [vmem:[%s2324_s8 + $0x20] sm:$0xff] }
  0xe5   :  { %v167_v7 = vadd.f32 %v1306_v53, %v166_v6  ;;  %v203_v8 = vsel %vm187_vm3, %v157_v63, %v195_v3  ;;  %v839_v63 = vld [vmem:[%s2324_s8 + $0x8] sm:$0xff]  ;;  %v1650_v3 = vpack.c.bf16 %v841_v2, %v840_v1 }
  0xe6   :  { %v198_v9 = vmul.f32 0.01, %v172_v5  ;;  %1481 = vmatprep.mubr.f32.mxu1 %v203_v8  ;;  %vm190_vm6 = vcmp.gt.f32.partialorder %v172_v5, 0.0  ;;  %v1646_v0 = vpack.c.bf16 %v839_v63, %v838_v62  ;;  %v845_v8 = vld [vmem:[%s2324_s8 + $0x38] sm:$0xff] }
  0xe7   :  { %v197_v11 = vmul.f32 0.01, %v167_v7  ;;  %v1445_v12 = vpop.f32.mrb[6].mxu0  ;;  %1482 = vmatmul.mubr.f32.gmra.mrb[2].mxu1 %v204_v10  ;;  %vm189_vm5 = vcmp.gt.f32.partialorder %v167_v7, 0.0  ;;  %v846_v10 = vld [vmem:[%s2324_s8 + $0x40] sm:$0xff] }
  0xe8   :  { %v182_v13 = vadd.f32 %v1445_v12, %v1306_v53  ;;  %v176_v14 = vpop.f32.mrb[7].mxu0  ;;  %v206_v18 = vsel %vm190_vm6, %v172_v5, %v198_v9  ;;  %1647 = vmatprep.subr.bf16.mxu0 %v1646_v0  ;;  %1678 = vmatprep.subr.bf16.mxu1 %v1646_v0  ;;  %v843_v5 = vld [vmem:[%s2324_s8 + $0x28] sm:$0xff]  ;;  %v848_v12 = vld [vmem:[%s2324_s8 + $0x50] sm:$0xff] }
  0xe9   :  { %v177_v15 = vadd.f32 %v1306_v53, %v176_v14  ;;  %v205_v16 = vsel %vm189_vm5, %v167_v7, %v197_v11  ;;  %1686 = vmatpush3.bf16.msra.mxu1 %v1646_v0  ;;  %v1654_v6 = vpack.c.bf16 %v843_v5, %v842_v4  ;;  %v844_v7 = vld [vmem:[%s2324_s8 + $0x30] sm:$0xff]  ;;  %v847_v11 = vld [vmem:[%s2324_s8 + $0x48] sm:$0xff]  ;;  %v849_v14 = vld [vmem:[%s2324_s8 + $0x58] sm:$0xff] }
  0xea   :  { %v200_v17 = vmul.f32 0.01, %v182_v13  ;;  %1484 = vmatprep.mubr.f32.mxu1 %v205_v16  ;;  %vm192_vm8 = vcmp.gt.f32.partialorder %v182_v13, 0.0  ;;  %1679 = vmatprep.subr.bf16.mxu1 %v1650_v3  ;;  %v1658_v9 = vpack.c.bf16 %v845_v8, %v844_v7  ;;  %v850_v16 = vld [vmem:[%s2324_s8 + $0x60] sm:$0xff] }
  0xeb   :  { %v199_v19 = vmul.f32 0.01, %v177_v15  ;;  %1485 = vmatmul.mubr.f32.gmra.mrb[4].mxu1 %v206_v18  ;;  %vm191_vm7 = vcmp.gt.f32.partialorder %v177_v15, 0.0 }
  0xec   :  { %v208_v21 = vsel %vm192_vm8, %v182_v13, %v200_v17  ;;  %v1662_v13 = vpack.c.bf16 %v847_v11, %v846_v10  ;;  %v851_v17 = vld [vmem:[%s2324_s8 + $0x68] sm:$0xff] }
  0xed   :  { %v207_v20 = vsel %vm191_vm7, %v177_v15, %v199_v19  ;;  %1687 = vmatpush3.bf16.msra.mxu1 %v1650_v3  ;;  %v1666_v15 = vpack.c.bf16 %v849_v14, %v848_v12  ;;  %v1670_v18 = vpack.c.bf16 %v851_v17, %v850_v16  ;;  %v852_v19 = vld [vmem:[%s2324_s8 + $0x70] sm:$0xff] }
  0xee   :  { %1487 = vmatprep.mubr.f32.mxu1 %v207_v20  ;;  %1680 = vmatprep.subr.bf16.mxu1 %v1654_v6  ;;  %v853_v20 = vld [vmem:[%s2324_s8 + $0x78] sm:$0xff] }
  0xef   :  { %1488 = vmatmul.mubr.f32.gmra.mrb[6].mxu1 %v208_v21  ;;  %v1674_v21 = vpack.c.bf16 %v853_v20, %v852_v19 }
  0xf1   :  { %1688 = vmatpush3.bf16.msra.mxu1 %v1654_v6 }
  0xf2   :  { %1681 = vmatprep.subr.bf16.mxu1 %v1658_v9 }
  0xf5   :  { %1689 = vmatpush3.bf16.msra.mxu1 %v1658_v9 }
  0xf6   :  { %1682 = vmatprep.subr.bf16.mxu1 %v1662_v13 }
  0xf9   :  { %1690 = vmatpush3.bf16.msra.mxu1 %v1662_v13 }
  0xfa   :  { %1683 = vmatprep.subr.bf16.mxu1 %v1666_v15 }
  0xfd   :  { %1691 = vmatpush3.bf16.msra.mxu1 %v1666_v15 }
  0xfe   :  { %1684 = vmatprep.subr.bf16.mxu1 %v1670_v18 }
 0x101   :  { %1692 = vmatpush3.bf16.msra.mxu1 %v1670_v18 }
 0x102   :  { %1685 = vmatprep.subr.bf16.mxu1 %v1674_v21 }
 0x105   :  { %1693 = vmatpush3.bf16.msra.mxu1 %v1674_v21 }
 0x1b6   :  { %v1480_v30 = vpop.f32.mrb[0].mxu1 }
 0x1b7   :  { %v304_v31 = vadd.f32 %v1480_v30, %v1315_v29  ;;  %v298_v32 = vpop.f32.mrb[1].mxu1 }
 0x1b8   :  { %v299_v33 = vadd.f32 %v1315_v29, %v298_v32 }
 0x1b9   :  { %v346_v34 = vmul.f32 0.01, %v304_v31  ;;  %vm338_vm9 = vcmp.gt.f32.partialorder %v304_v31, 0.0 }
 0x1ba   :  { %v345_v35 = vmul.f32 0.01, %v299_v33  ;;  %v1483_v36 = vpop.f32.mrb[2].mxu1  ;;  %vm337_vm10 = vcmp.gt.f32.partialorder %v299_v33, 0.0 }
 0x1bb   :  { %v314_v37 = vadd.f32 %v1483_v36, %v1315_v29  ;;  %v308_v38 = vpop.f32.mrb[3].mxu1  ;;  %v354_v41 = vsel %vm338_vm9, %v304_v31, %v346_v34  ;;  %v1965_v31 = vld [vmem:[%s2325_s6 + $0x2] ss:$0 sm:$0xff]  ;;  %v585_v36 = vadd.f32 %v577_v27, %v548_v26 }
 0x1bc   :  { %v309_v39 = vadd.f32 %v1315_v29, %v308_v38  ;;  %v353_v40 = vsel %vm337_vm10, %v299_v33, %v345_v35 }
 0x1bd   :  { %v348_v42 = vmul.f32 0.01, %v314_v37  ;;  %1522 = vmatprep.mubr.f32.mxu0 %v353_v40  ;;  %vm340_vm12 = vcmp.gt.f32.partialorder %v314_v37, 0.0  ;;  %v1972_v40 = vld [vmem:[%s2325_s6 + $0x9] ss:$0 sm:$0xff] }
 0x1be   :  { %v347_v43 = vmul.f32 0.01, %v309_v39  ;;  %v1486_v44 = vpop.f32.mrb[4].mxu1  ;;  %1523 = vmatmul.mubr.f32.vlgmr.msra.gmra.mrb[8].mxu0 %v354_v41  ;;  %vm339_vm11 = vcmp.gt.f32.partialorder %v309_v39, 0.0 }
 0x1bf   :  { %v324_v45 = vadd.f32 %v1486_v44, %v1315_v29  ;;  %v318_v46 = vpop.f32.mrb[5].mxu1  ;;  %v356_v50 = vsel %vm340_vm12, %v314_v37, %v348_v42  ;;  %1649 = vmatpush3.bf16.msra.mxu0 %v1646_v0  ;;  %v606_v37 = vmul.f32 %v1965_v31, %v1960_v28  ;;  %v1977_v42 = vld [vmem:[%s2325_s6 + $0x5] ss:$0 sm:$0xff] }
 0x1c0   :  { %v319_v47 = vadd.f32 %v1315_v29, %v318_v46  ;;  %v355_v48 = vsel %vm339_vm11, %v309_v39, %v347_v43  ;;  %1651 = vmatprep.subr.bf16.mxu0 %v1650_v3 }
 0x1c1   :  { %v350_v49 = vmul.f32 0.01, %v324_v45  ;;  %1525 = vmatprep.mubr.f32.mxu0 %v355_v48  ;;  %vm342_vm14 = vcmp.gt.f32.partialorder %v324_v45, 0.0  ;;  %v614_v46 = vadd.f32 %v606_v37, %v585_v36 }
 0x1c2   :  { %v349_v51 = vmul.f32 0.01, %v319_v47  ;;  %v1489_v52 = vpop.f32.mrb[6].mxu1  ;;  %1526 = vmatmul.mubr.f32.gmra.mrb[10].mxu0 %v356_v50  ;;  %vm341_vm13 = vcmp.gt.f32.partialorder %v319_v47, 0.0  ;;  %v1985_v50 = vld [vmem:[%s2325_s6 + $0x4] ss:$0 sm:$0xff] }
 0x1c3   :  { %v334_v53 = vadd.f32 %v1489_v52, %v1315_v29  ;;  %v328_v54 = vpop.f32.mrb[7].mxu1  ;;  %v358_v58 = vsel %vm342_vm14, %v324_v45, %v350_v49  ;;  %1653 = vmatpush3.bf16.msra.mxu0 %v1650_v3  ;;  %v2020_v3 = vld [vmem:[%s2325_s6 + $0x6] ss:$0 sm:$0xff] }
 0x1c4   :  { %v329_v55 = vadd.f32 %v1315_v29, %v328_v54  ;;  %v357_v56 = vsel %vm341_vm13, %v319_v47, %v349_v51  ;;  %1655 = vmatprep.subr.bf16.mxu0 %v1654_v6 }
 0x1c5   :  { %v352_v57 = vmul.f32 0.01, %v334_v53  ;;  %1528 = vmatprep.mubr.f32.mxu0 %v357_v56  ;;  %vm344_vm0 = vcmp.gt.f32.partialorder %v334_v53, 0.0 }
 0x1c6   :  { %v351_v59 = vmul.f32 0.01, %v329_v55  ;;  %1529 = vmatmul.mubr.f32.gmra.mrb[12].mxu0 %v358_v58  ;;  %vm343_vm15 = vcmp.gt.f32.partialorder %v329_v55, 0.0 }
 0x1c7   :  { %v360_v61 = vsel %vm344_vm0, %v334_v53, %v352_v57  ;;  %1657 = vmatpush3.bf16.msra.mxu0 %v1654_v6 }
 0x1c8   :  { %v359_v60 = vsel %vm343_vm15, %v329_v55, %v351_v59  ;;  %1659 = vmatprep.subr.bf16.mxu0 %v1658_v9  ;;  %v1995_v55 = vld [vmem:[%s2325_s6 + $0x8] ss:$0 sm:$0xff] }
 0x1c9   :  { %1531 = vmatprep.mubr.f32.mxu0 %v359_v60  ;;  %v2003_v60 = vld [vmem:[%s2325_s6 + $0xa] ss:$0 sm:$0xff] }
 0x1ca   :  { %1532 = vmatmul.mubr.f32.gmra.mrb[14].mxu0 %v360_v61 }
 0x1cb   :  { %1661 = vmatpush3.bf16.msra.mxu0 %v1658_v9 }
 0x1cc   :  { %1663 = vmatprep.subr.bf16.mxu0 %v1662_v13 }
 0x1cf   :  { %1665 = vmatpush3.bf16.msra.mxu0 %v1662_v13 }
 0x1d0   :  { %1667 = vmatprep.subr.bf16.mxu0 %v1666_v15 }
 0x1d3   :  { %1669 = vmatpush3.bf16.msra.mxu0 %v1666_v15 }
 0x1d4   :  { %1671 = vmatprep.subr.bf16.mxu0 %v1670_v18 }
 0x1d7   :  { %1673 = vmatpush3.bf16.msra.mxu0 %v1670_v18 }
 0x1d8   :  { %1675 = vmatprep.subr.bf16.mxu0 %v1674_v21 }
 0x1db   :  { %1677 = vmatpush3.bf16.msra.mxu0 %v1674_v21 }
 0x291   :  { %v1524_v25 = vpop.f32.mrb[8].mxu0 }
 0x292   :  { %vm503_vm1 = vcmp.gt.f32.partialorder %v1524_v25, 0.0  ;;  %v511_v29 = vmul.f32 0.01, %v1524_v25  ;;  %v463_v30 = vpop.f32.mrb[9].mxu0 }
 0x293   :  { %vm502_vm2 = vcmp.gt.f32.partialorder %v463_v30, 0.0  ;;  %v510_v32 = vmul.f32 0.01, %v463_v30 }
 0x294   :  { %v519_v33 = vsel %vm503_vm1, %v1524_v25, %v511_v29 }
 0x295   :  { %528 = vst [vmem:[#allocation2 + $0x21] sm:$0xff] %v519_v33  ;;  %v518_v34 = vsel %vm502_vm2, %v463_v30, %v510_v32  ;;  %v1527_v35 = vpop.f32.mrb[10].mxu0  ;;  %v1980_v47 = vmul.f32 %v1972_v40, %v519_v33  ;;  %v1988_v51 = vmul.f32 %v1977_v42, %v519_v33  ;;  %v579_v52 = vmul.f32 %v1955_v24, %v519_v33 }
 0x296   :  { %527 = vst [vmem:[#allocation2 + $0x11] sm:$0xff] %v518_v34  ;;  %vm505_vm3 = vcmp.gt.f32.partialorder %v1527_v35, 0.0  ;;  %v513_v38 = vmul.f32 0.01, %v1527_v35  ;;  %v473_v39 = vpop.f32.mrb[11].mxu0  ;;  %v665_v54 = vmul.f32 %v1977_v42, %v518_v34  ;;  %v578_v56 = vmul.f32 %v1955_v24, %v518_v34 }
 0x297   :  { %vm504_vm4 = vcmp.gt.f32.partialorder %v473_v39, 0.0  ;;  %v512_v41 = vmul.f32 0.01, %v473_v39 }
 0x298   :  { %v521_v43 = vsel %vm505_vm3, %v1527_v35, %v513_v38 }
 0x299   :  { %530 = vst [vmem:[#allocation2 + $0x41] sm:$0xff] %v521_v43  ;;  %v520_v44 = vsel %vm504_vm4, %v473_v39, %v512_v41  ;;  %v1530_v45 = vpop.f32.mrb[12].mxu0  ;;  %v2006_v61 = vmul.f32 %v1972_v40, %v521_v43  ;;  %v2009_v62 = vmul.f32 %v1977_v42, %v521_v43  ;;  %v2012_v63 = vmul.f32 %v1955_v24, %v521_v43 }
 0x29a   :  { %529 = vst [vmem:[#allocation2 + $0x31] sm:$0xff] %v520_v44  ;;  %vm507_vm5 = vcmp.gt.f32.partialorder %v1530_v45, 0.0  ;;  %v515_v48 = vmul.f32 0.01, %v1530_v45  ;;  %v483_v49 = vpop.f32.mrb[13].mxu0  ;;  %v2023_v4 = vmul.f32 %v1972_v40, %v520_v44  ;;  %v667_v5 = vmul.f32 %v1977_v42, %v520_v44 }
 0x29b   :  { %vm506_vm6 = vcmp.gt.f32.partialorder %v483_v49, 0.0  ;;  %v514_v53 = vmul.f32 0.01, %v483_v49  ;;  %v580_v6 = vmul.f32 %v1955_v24, %v520_v44 }
 0x29c   :  { %v1998_v57 = vsel %vm507_vm5, %v1530_v45, %v515_v48  ;;  %v711_v58 = vld [vmem:[#allocation2 + $0x20] sm:$0xff] }
 0x29d   :  { %v770_v59 = vld [vmem:[#allocation2 + $0x22] sm:$0xff]  ;;  %532 = vst [vmem:[#allocation2 + $0x61] sm:$0xff] %v1998_v57  ;;  %v2015_v0 = vsel %vm506_vm6, %v483_v49, %v514_v53  ;;  %v1533_v1 = vpop.f32.mrb[14].mxu0  ;;  %v622_v2 = vld [vmem:[#allocation2 + $0x10] sm:$0xff]  ;;  %v725_v11 = vmul.f32 %v1995_v55, %v711_v58  ;;  %v637_v17 = vmul.f32 %v1985_v50, %v711_v58  ;;  %v550_v18 = vmul.f32 %v1948_v22, %v711_v58 }
 0x29e   :  { %531 = vst [vmem:[#allocation2 + $0x51] sm:$0xff] %v2015_v0  ;;  %vm509_vm7 = vcmp.gt.f32.partialorder %v1533_v1, 0.0  ;;  %v517_v7 = vmul.f32 0.01, %v1533_v1  ;;  %v493_v8 = vpop.f32.mrb[15].mxu0  ;;  %v636_v9 = vmul.f32 %v1985_v50, %v622_v2  ;;  %v681_v10 = vld [vmem:[#allocation2 + $0x12] sm:$0xff]  ;;  %v783_v13 = vmul.f32 %v2003_v60, %v770_v59 }
 0x29f   :  { %vm508_vm8 = vcmp.gt.f32.partialorder %v493_v8, 0.0  ;;  %v516_v12 = vmul.f32 0.01, %v493_v8  ;;  %v549_v14 = vmul.f32 %v1948_v22, %v622_v2  ;;  %v694_v21 = vmul.f32 %v2020_v3, %v681_v10 }
 0x2a0   :  { %v2032_v15 = vsel %vm509_vm7, %v1533_v1, %v517_v7  ;;  %v644_v16 = vadd.f32 %v636_v9, %v614_v46  ;;  %v713_v19 = vld [vmem:[#allocation2 + $0x40] sm:$0xff]  ;;  %v607_v26 = vmul.f32 %v1965_v31, %v681_v10  ;;  %v695_v32 = vmul.f32 %v2020_v3, %v770_v59 }
 0x2a1   :  { %534 = vst [vmem:[#allocation2 + $0x81] sm:$0xff] %v2032_v15  ;;  %v2037_v20 = vsel %vm508_vm8, %v493_v8, %v516_v12  ;;  %v586_v25 = vadd.f32 %v578_v56, %v549_v14  ;;  %v712_v27 = vld [vmem:[#allocation2 + $0x30] sm:$0xff]  ;;  %v587_v33 = vadd.f32 %v579_v52, %v550_v18  ;;  %v608_v34 = vmul.f32 %v1965_v31, %v770_v59  ;;  %v772_v35 = vld [vmem:[#allocation2 + $0x42] sm:$0xff] }
 0x2a2   :  { %v771_v29 = vld [vmem:[#allocation2 + $0x32] sm:$0xff]  ;;  %533 = vst [vmem:[#allocation2 + $0x71] sm:$0xff] %v2037_v20  ;;  %v673_v30 = vadd.f32 %v665_v54, %v644_v16  ;;  %v726_v37 = vmul.f32 %v1995_v55, %v712_v27  ;;  %v638_v38 = vmul.f32 %v1985_v50, %v712_v27  ;;  %v727_v39 = vmul.f32 %v1995_v55, %v713_v19 }
 0x2a3   :  { %v615_v36 = vadd.f32 %v607_v26, %v586_v25  ;;  %v784_v43 = vmul.f32 %v2003_v60, %v771_v29  ;;  %v616_v44 = vadd.f32 %v608_v34, %v587_v33  ;;  %v551_v45 = vmul.f32 %v1948_v22, %v712_v27 }
 0x2a4   :  { %v702_v41 = vadd.f32 %v694_v21, %v673_v30  ;;  %v696_v48 = vmul.f32 %v2020_v3, %v771_v29  ;;  %v785_v49 = vmul.f32 %v2003_v60, %v772_v35  ;;  %v609_v52 = vmul.f32 %v1965_v31, %v771_v29 }
 0x2a5   :  { %v645_v46 = vadd.f32 %v637_v17, %v615_v36  ;;  %v714_v53 = vld [vmem:[#allocation2 + $0x50] sm:$0xff]  ;;  %v646_v56 = vadd.f32 %v638_v38, %v616_v44  ;;  %v588_v58 = vadd.f32 %v580_v6, %v551_v45  ;;  %v639_v59 = vmul.f32 %v1985_v50, %v713_v19  ;;  %v2063_v6 = vld [vmem:[%s2326_s7] ss:$0 sm:$0xff] }
 0x2a6   :  { %v733_v54 = vadd.f32 %v725_v11, %v702_v41  ;;  %v697_v2 = vmul.f32 %v2020_v3, %v772_v35  ;;  %v757_v7 = vmul.f32 %v1972_v40, %v2015_v0  ;;  %v773_v8 = vld [vmem:[#allocation2 + $0x52] sm:$0xff]  ;;  %v552_v9 = vmul.f32 %v1948_v22, %v713_v19 }
 0x2a7   :  { %v674_v1 = vadd.f32 %v1988_v51, %v645_v46  ;;  %v675_v12 = vadd.f32 %v667_v5, %v646_v56  ;;  %v617_v14 = vadd.f32 %v609_v52, %v588_v58  ;;  %v728_v11 = vmul.f32 %v1995_v55, %v714_v53  ;;  %v715_v5 = vld [vmem:[#allocation2 + $0x60] sm:$0xff] }
 0x2a8   :  { %v762_v10 = vadd.f32 %v1980_v47, %v733_v54  ;;  %v589_v16 = vadd.f32 %v2012_v63, %v552_v9  ;;  %v610_v17 = vmul.f32 %v1965_v31, %v772_v35  ;;  %v640_v18 = vmul.f32 %v1985_v50, %v714_v53 }
 0x2a9   :  { %v703_v51 = vadd.f32 %v695_v32, %v674_v1  ;;  %v704_v19 = vadd.f32 %v696_v48, %v675_v12  ;;  %v647_v25 = vadd.f32 %v639_v59, %v617_v14  ;;  %v786_v47 = vmul.f32 %v2003_v60, %v773_v8 }
 0x2aa   :  { %v791_v21 = vadd.f32 %v783_v13, %v762_v10  ;;  %v618_v27 = vadd.f32 %v610_v17, %v589_v16  ;;  %v669_v29 = vmul.f32 %v1977_v42, %v2015_v0  ;;  %v698_v30 = vmul.f32 %v2020_v3, %v773_v8 }
 0x2ab   :  { %v734_v26 = vadd.f32 %v726_v37, %v703_v51  ;;  %v735_v63 = vadd.f32 %v727_v39, %v704_v19  ;;  %v676_v33 = vadd.f32 %v2009_v62, %v647_v25  ;;  %v553_v34 = vmul.f32 %v1948_v22, %v714_v53  ;;  %v774_v39 = vld [vmem:[#allocation2 + $0x62] sm:$0xff] }
 0x2ac   :  { %v806_v32 = vadd.f32 %v2063_v6, %v791_v21  ;;  %v648_v35 = vadd.f32 %v640_v18, %v618_v27  ;;  %v729_v36 = vmul.f32 %v1995_v55, %v715_v5  ;;  %v582_v37 = vmul.f32 %v1955_v24, %v2015_v0  ;;  %v775_v27 = vld [vmem:[#allocation2 + $0x72] sm:$0xff] }
 0x2ad   :  { %v763_v13 = vadd.f32 %v2023_v4, %v734_v26  ;;  %v764_v41 = vadd.f32 %v2006_v61, %v735_v63  ;;  %v705_v44 = vadd.f32 %v697_v2, %v676_v33  ;;  %v611_v62 = vmul.f32 %v1965_v31, %v773_v8 }
 0x2ae   :  { %vm814_vm9 = vcmp.gt.f32.partialorder %v806_v32, 0.0  ;;  %v822_v38 = vmul.f32 0.01, %v806_v32  ;;  %v677_v46 = vadd.f32 %v669_v29, %v648_v35  ;;  %v590_v48 = vadd.f32 %v582_v37, %v553_v34 }
 0x2af   :  { %v792_v45 = vadd.f32 %v784_v43, %v763_v13  ;;  %v793_v53 = vadd.f32 %v785_v49, %v764_v41  ;;  %v736_v4 = vadd.f32 %v728_v11, %v705_v44  ;;  %v758_v54 = vmul.f32 %v1972_v40, %v1998_v57  ;;  %v716_v11 = vld [vmem:[#allocation2 + $0x70] sm:$0xff] }
 0x2b0   :  { %v830_v52 = vsel %vm814_vm9, %v806_v32, %v822_v38  ;;  %v706_v56 = vadd.f32 %v698_v30, %v677_v46  ;;  %v619_v58 = vadd.f32 %v611_v62, %v590_v48  ;;  %v641_v61 = vmul.f32 %v1985_v50, %v715_v5  ;;  %v717_v46 = vld [vmem:[#allocation2 + $0x80] sm:$0xff] }
 0x2b1   :  { %1566 = vmatprep.mubr.f32.mxu0 %v830_v52  ;;  %v807_v0 = vadd.f32 %v2063_v6, %v792_v45  ;;  %v808_v43 = vadd.f32 %v2063_v6, %v793_v53  ;;  %v765_v59 = vadd.f32 %v757_v7, %v736_v4  ;;  %v787_v1 = vmul.f32 %v2003_v60, %v774_v39 }
 0x2b2   :  { %v670_v2 = vmul.f32 %v1977_v42, %v1998_v57  ;;  %v737_v8 = vadd.f32 %v729_v36, %v706_v56  ;;  %v649_v9 = vadd.f32 %v641_v61, %v619_v58  ;;  %v699_v14 = vmul.f32 %v2020_v3, %v774_v39  ;;  %v776_v58 = vld [vmem:[#allocation2 + $0x82] sm:$0xff] }
 0x2b3   :  { %vm815_vm10 = vcmp.gt.f32.partialorder %v807_v0, 0.0  ;;  %v823_v49 = vmul.f32 0.01, %v807_v0  ;;  %vm816_vm11 = vcmp.gt.f32.partialorder %v808_v43, 0.0  ;;  %v824_v10 = vmul.f32 0.01, %v808_v43 }
 0x2b4   :  { %v794_v12 = vadd.f32 %v786_v47, %v765_v59  ;;  %v766_v16 = vadd.f32 %v758_v54, %v737_v8  ;;  %v678_v17 = vadd.f32 %v670_v2, %v649_v9  ;;  %v554_v7 = vmul.f32 %v1948_v22, %v715_v5 }
 0x2b5   :  { %v831_v51 = vsel %vm815_vm10, %v807_v0, %v823_v49  ;;  %v832_v18 = vsel %vm816_vm11, %v808_v43, %v824_v10  ;;  %v583_v19 = vmul.f32 %v1955_v24, %v1998_v57  ;;  %v730_v47 = vmul.f32 %v1995_v55, %v716_v11 }
 0x2b6   :  { %1567 = vmatmul.mubr.f32.vlgmr.msra.gmra.mrb[16].mxu0 %v831_v51  ;;  %v809_v21 = vadd.f32 %v2063_v6, %v794_v12  ;;  %1569 = vmatprep.mubr.f32.mxu1 %v832_v18  ;;  %v795_v25 = vadd.f32 %v787_v1, %v766_v16  ;;  %v707_v26 = vadd.f32 %v699_v14, %v678_v17  ;;  %v2115_v1 = vld [vmem:[#allocation2 + $0x91] sm:$0xff]  ;;  %v732_v8 = vmul.f32 0.0, %v1995_v55 }
 0x2b7   :  { %v612_v29 = vmul.f32 %v1965_v31, %v774_v39  ;;  %v591_v32 = vadd.f32 %v583_v19, %v554_v7  ;;  %v642_v5 = vmul.f32 %v1985_v50, %v716_v11  ;;  %v759_v34 = vmul.f32 %v1972_v40, %v2037_v20  ;;  %v2120_v12 = vld [vmem:[#allocation2 + $0x92] sm:$0xff] }
 0x2b8   :  { %vm817_vm12 = vcmp.gt.f32.partialorder %v809_v21, 0.0  ;;  %v825_v30 = vmul.f32 0.01, %v809_v21  ;;  %v810_v63 = vadd.f32 %v2063_v6, %v795_v25  ;;  %v738_v33 = vadd.f32 %v730_v47, %v707_v26  ;;  %v2131_v25 = vld [vmem:[%s2327_s9] ss:$0 sm:$0xff] }
 0x2b9   :  { %v788_v13 = vmul.f32 %v2003_v60, %v775_v27  ;;  %v620_v35 = vadd.f32 %v612_v29, %v591_v32  ;;  %v555_v36 = vmul.f32 %v1948_v22, %v716_v11  ;;  %v584_v41 = vmul.f32 %v1955_v24, %v2037_v20  ;;  %v2136_v47 = vld [vmem:[%s2327_s9 + $0x1] ss:$0 sm:$0xff]  ;;  %v2144_v32 = vld [vmem:[%s2327_s9 + $0x2] ss:$0 sm:$0xff] }
 0x2ba   :  { %v833_v57 = vsel %vm817_vm12, %v809_v21, %v825_v30  ;;  %vm818_vm13 = vcmp.gt.f32.partialorder %v810_v63, 0.0  ;;  %v826_v37 = vmul.f32 0.01, %v810_v63  ;;  %v767_v38 = vadd.f32 %v759_v34, %v738_v33 }
 0x2bb   :  { %1570 = vmatmul.mubr.f32.vlgmr.msra.gmra.mrb[8].mxu1 %v833_v57  ;;  %v650_v44 = vadd.f32 %v642_v5, %v620_v35  ;;  %v671_v45 = vmul.f32 %v1977_v42, %v2037_v20  ;;  %v592_v62 = vadd.f32 %v584_v41, %v555_v36  ;;  %v613_v52 = vmul.f32 %v1965_v31, %v775_v27 }
 0x2bc   :  { %v834_v39 = vsel %vm818_vm13, %v810_v63, %v826_v37  ;;  %v796_v48 = vadd.f32 %v788_v13, %v767_v38  ;;  %v700_v22 = vmul.f32 %v2020_v3, %v775_v27  ;;  %v643_v0 = vmul.f32 %v1985_v50, %v717_v46  ;;  %v2156_v37 = vld [vmem:[%s2327_s9 + $0x4] ss:$0 sm:$0xff] }
 0x2bd   :  { %1572 = vmatprep.mubr.f32.mxu1 %v834_v39  ;;  %v679_v53 = vadd.f32 %v671_v45, %v650_v44  ;;  %v621_v54 = vadd.f32 %v613_v52, %v592_v62  ;;  %v731_v56 = vmul.f32 %v1995_v55, %v717_v46  ;;  %v672_v43 = vmul.f32 %v1977_v42, %v2032_v15 }
 0x2be   :  { %v811_v4 = vadd.f32 %v2063_v6, %v796_v48  ;;  %v760_v59 = vmul.f32 %v1972_v40, %v2032_v15  ;;  %v701_v50 = vmul.f32 %v2020_v3, %v776_v58  ;;  %v789_v10 = vmul.f32 %v2003_v60, %v776_v58 }
 0x2bf   :  { %v708_v24 = vadd.f32 %v700_v22, %v679_v53  ;;  %v651_v61 = vadd.f32 %v643_v0, %v621_v54  ;;  %v761_v42 = vmul.f32 %v1972_v40, %v2115_v1  ;;  %v790_v51 = vmul.f32 %v2003_v60, %v2120_v12  ;;  %v2172_v22 = vld [vmem:[%s2327_s9 + $0x9] ss:$0 sm:$0xff]  ;;  %v2178_v0 = vld [vmem:[%s2327_s9 + $0x6] ss:$0 sm:$0xff] }
 0x2c0   :  { %vm819_vm14 = vcmp.gt.f32.partialorder %v811_v4, 0.0  ;;  %v827_v20 = vmul.f32 0.01, %v811_v4  ;;  %v1004_v29 = vmul.f32 0.0, %v2131_v25  ;;  %v1033_v30 = vmul.f32 %v2136_v47, %v1950_v23 }
 0x2c1   :  { %v739_v31 = vadd.f32 %v731_v56, %v708_v24  ;;  %v680_v49 = vadd.f32 %v672_v43, %v651_v61  ;;  %v1062_v13 = vmul.f32 %v2144_v32, %v1960_v28  ;;  %v2162_v28 = vld [vmem:[%s2327_s9 + $0x5] ss:$0 sm:$0xff]  ;;  %v2183_v24 = vld [vmem:[%s2327_s9 + $0x8] ss:$0 sm:$0xff]  ;;  %vm1293_vm8 = vcmask 261120  }
 0x2c2   :  { %v835_v2 = vsel %vm819_vm14, %v811_v4, %v827_v20  ;;  %v1041_v57 = vadd.f32 %v1033_v30, %v1004_v29 }
 0x2c3   :  { %1573 = vmatmul.mubr.f32.gmra.mrb[10].mxu1 %v835_v2  ;;  %v768_v9 = vadd.f32 %v760_v59, %v739_v31  ;;  %v709_v14 = vadd.f32 %v701_v50, %v680_v49 }
 0x2c4   :  { %v1070_v41 = vadd.f32 %v1062_v13, %v1041_v57 }
 0x2c5   :  { %v797_v11 = vadd.f32 %v789_v10, %v768_v9  ;;  %v740_v15 = vadd.f32 %v732_v8, %v709_v14 }
 0x2c7   :  { %v812_v16 = vadd.f32 %v2063_v6, %v797_v11  ;;  %v769_v3 = vadd.f32 %v761_v42, %v740_v15  ;;  %v2197_v42 = vld [vmem:[%s2327_s9 + $0xa] ss:$0 sm:$0xff] }
 0x2c9   :  { %vm820_vm15 = vcmp.gt.f32.partialorder %v812_v16, 0.0  ;;  %v828_v55 = vmul.f32 0.01, %v812_v16  ;;  %v798_v17 = vadd.f32 %v790_v51, %v769_v3 }
 0x2cb   :  { %v836_v7 = vsel %vm820_vm15, %v812_v16, %v828_v55  ;;  %v813_v18 = vadd.f32 %v2063_v6, %v798_v17 }
 0x2cc   :  { %1575 = vmatprep.mubr.f32.mxu1 %v836_v7 }
 0x2cd   :  { %vm821_vm0 = vcmp.gt.f32.partialorder %v813_v18, 0.0  ;;  %v829_v21 = vmul.f32 0.01, %v813_v18 }
 0x2cf   :  { %v837_v19 = vsel %vm821_vm0, %v813_v18, %v829_v21 }
 0x2d0   :  { %1576 = vmatmul.mubr.f32.gmra.mrb[12].mxu1 %v837_v19 }
 0x389   :  { %v1568_v40 = vpop.f32.mrb[16].mxu0 }
 0x38a   :  { %vm960_vm1 = vcmp.gt.f32.partialorder %v1568_v40, 0.0  ;;  %v968_v60 = vmul.f32 0.01, %v1568_v40  ;;  %v920_v26 = vpop.f32.mrb[17].mxu0 }
 0x38b   :  { %vm959_vm2 = vcmp.gt.f32.partialorder %v920_v26, 0.0  ;;  %v967_v6 = vmul.f32 0.01, %v920_v26 }
 0x38c   :  { %v976_v27 = vsel %vm960_vm1, %v1568_v40, %v968_v60 }
 0x38d   :  { %984 = vst [vmem:[#allocation2 + $0x21] sm:$0xff] %v976_v27  ;;  %v975_v5 = vsel %vm959_vm2, %v920_v26, %v967_v6  ;;  %v1035_v45 = vmul.f32 %v2136_v47, %v976_v27  ;;  %v1122_v54 = vmul.f32 %v2162_v28, %v976_v27  ;;  %v1209_v49 = vmul.f32 %v2172_v22, %v976_v27 }
 0x38e   :  { %983 = vst [vmem:[#allocation2 + $0x11] sm:$0xff] %v975_v5  ;;  %v1571_v63 = vpop.f32.mrb[8].mxu1  ;;  %v1034_v52 = vmul.f32 %v2136_v47, %v975_v5  ;;  %v1121_v43 = vmul.f32 %v2162_v28, %v975_v5 }
 0x38f   :  { %vm962_vm3 = vcmp.gt.f32.partialorder %v1571_v63, 0.0  ;;  %v970_v33 = vmul.f32 0.01, %v1571_v63  ;;  %v930_v34 = vpop.f32.mrb[9].mxu1 }
 0x390   :  { %vm961_vm4 = vcmp.gt.f32.partialorder %v930_v34, 0.0  ;;  %v969_v35 = vmul.f32 0.01, %v930_v34 }
 0x391   :  { %v2148_v36 = vsel %vm962_vm3, %v1571_v63, %v970_v33 }
 0x392   :  { %986 = vst [vmem:[#allocation2 + $0x41] sm:$0xff] %v2148_v36  ;;  %v2151_v23 = vsel %vm961_vm4, %v930_v34, %v969_v35 }
 0x393   :  { %985 = vst [vmem:[#allocation2 + $0x31] sm:$0xff] %v2151_v23  ;;  %v1036_v50 = vmul.f32 %v2136_v47, %v2151_v23  ;;  %v1123_v60 = vmul.f32 %v2162_v28, %v2151_v23 }
 0x394   :  { %v993_v38 = vld [vmem:[#allocation2 + $0x20] sm:$0xff] }
 0x395   :  { %v1006_v44 = vmul.f32 %v2131_v25, %v993_v38  ;;  %v992_v46 = vld [vmem:[#allocation2 + $0x10] sm:$0xff]  ;;  %v1051_v48 = vld [vmem:[#allocation2 + $0x22] sm:$0xff]  ;;  %v1093_v2 = vmul.f32 %v2156_v37, %v993_v38  ;;  %v1180_v14 = vmul.f32 %v2183_v24, %v993_v38  ;;  %v2215_v38 = vld [vmem:[%s2328_s10] ss:$0 sm:$0xff] }
 0x396   :  { %v1050_v39 = vld [vmem:[#allocation2 + $0x12] sm:$0xff]  ;;  %v1005_v62 = vmul.f32 %v2131_v25, %v992_v46  ;;  %v1092_v53 = vmul.f32 %v2156_v37, %v992_v46  ;;  %v1574_v56 = vpop.f32.mrb[10].mxu1  ;;  %v1064_v59 = vmul.f32 %v2144_v32, %v1051_v48  ;;  %v1151_v21 = vmul.f32 %v2178_v0, %v1051_v48 }
 0x397   :  { %v1043_v4 = vadd.f32 %v1035_v45, %v1006_v44  ;;  %v1063_v20 = vmul.f32 %v2144_v32, %v1050_v39  ;;  %v940_v31 = vpop.f32.mrb[11].mxu1  ;;  %v1150_v10 = vmul.f32 %v2178_v0, %v1050_v39  ;;  %vm964_vm5 = vcmp.gt.f32.partialorder %v1574_v56, 0.0 }
 0x398   :  { %v1042_v58 = vadd.f32 %v1034_v52, %v1005_v62  ;;  %v1100_v61 = vadd.f32 %v1092_v53, %v1070_v41  ;;  %v972_v16 = vmul.f32 0.01, %v1574_v56  ;;  %v971_v3 = vmul.f32 0.01, %v940_v31 }
 0x399   :  { %v1072_v15 = vadd.f32 %v1064_v59, %v1043_v4  ;;  %v995_v7 = vld [vmem:[#allocation2 + $0x40] sm:$0xff]  ;;  %vm963_vm6 = vcmp.gt.f32.partialorder %v940_v31, 0.0  ;;  %v1238_v19 = vmul.f32 %v2197_v42, %v1051_v48  ;;  %v1124_v44 = vmul.f32 %v2162_v28, %v2148_v36 }
 0x39a   :  { %v1071_v8 = vadd.f32 %v1063_v20, %v1042_v58  ;;  %v1129_v9 = vadd.f32 %v1121_v43, %v1100_v61  ;;  %v994_v11 = vld [vmem:[#allocation2 + $0x30] sm:$0xff]  ;;  %v1095_v30 = vmul.f32 %v2156_v37, %v995_v7  ;;  %v2208_v63 = vsel %vm964_vm5, %v1574_v56, %v972_v16  ;;  %v1053_v58 = vld [vmem:[#allocation2 + $0x42] sm:$0xff] }
 0x39b   :  { %v1052_v51 = vld [vmem:[#allocation2 + $0x32] sm:$0xff]  ;;  %v1007_v18 = vmul.f32 %v2131_v25, %v994_v11  ;;  %v1094_v40 = vmul.f32 %v2156_v37, %v994_v11  ;;  %v979_v33 = vsel %vm963_vm6, %v940_v31, %v971_v3  ;;  %v1181_v35 = vmul.f32 %v2183_v24, %v994_v11  ;;  %988 = vst [vmem:[#allocation2 + $0x61] sm:$0xff] %v2208_v63 }
 0x39c   :  { %v1101_v55 = vadd.f32 %v1093_v2, %v1071_v8  ;;  %v1158_v17 = vadd.f32 %v1150_v10, %v1129_v9  ;;  %v1065_v29 = vmul.f32 %v2144_v32, %v1052_v51  ;;  %987 = vst [vmem:[#allocation2 + $0x51] sm:$0xff] %v979_v33  ;;  %v1008_v41 = vmul.f32 %v2131_v25, %v995_v7 }
 0x39d   :  { %v1044_v27 = vadd.f32 %v1036_v50, %v1007_v18  ;;  %v1102_v5 = vadd.f32 %v1094_v40, %v1072_v15  ;;  %v1152_v46 = vmul.f32 %v2178_v0, %v1052_v51  ;;  %v1210_v52 = vmul.f32 %v2172_v22, %v2151_v23 }
 0x39e   :  { %v1130_v26 = vadd.f32 %v1122_v54, %v1101_v55  ;;  %v1188_v6 = vadd.f32 %v1180_v14, %v1158_v17  ;;  %v1037_v53 = vmul.f32 %v2136_v47, %v2148_v36  ;;  %v1182_v4 = vmul.f32 %v2183_v24, %v995_v7 }
 0x39f   :  { %v1073_v13 = vadd.f32 %v1065_v29, %v1044_v27  ;;  %v1131_v45 = vadd.f32 %v1123_v60, %v1102_v5  ;;  %v1239_v61 = vmul.f32 %v2197_v42, %v1052_v51  ;;  %v1211_v59 = vmul.f32 %v2172_v22, %v2148_v36 }
 0x3a0   :  { %v1159_v34 = vadd.f32 %v1151_v21, %v1130_v26  ;;  %v1217_v57 = vadd.f32 %v1209_v49, %v1188_v6  ;;  %v1045_v31 = vadd.f32 %v1037_v53, %v1008_v41  ;;  %v1066_v9 = vmul.f32 %v2144_v32, %v1053_v58 }
 0x3a1   :  { %v1103_v48 = vadd.f32 %v1095_v30, %v1073_v13  ;;  %v1160_v54 = vadd.f32 %v1152_v46, %v1131_v45  ;;  %v1240_v10 = vmul.f32 %v2197_v42, %v1053_v58  ;;  %v1153_v15 = vmul.f32 %v2178_v0, %v1053_v58 }
 0x3a2   :  { %v1246_v39 = vadd.f32 %v1238_v19, %v1217_v57  ;;  %v1189_v62 = vadd.f32 %v1181_v35, %v1159_v34  ;;  %v1074_v36 = vadd.f32 %v1066_v9, %v1045_v31  ;;  %v1038_v55 = vmul.f32 %v2136_v47, %v979_v33  ;;  %v997_v60 = vld [vmem:[#allocation2 + $0x60] sm:$0xff] }
 0x3a3   :  { %v1132_v43 = vadd.f32 %v1124_v44, %v1103_v48  ;;  %v1190_v2 = vadd.f32 %v1182_v4, %v1160_v54  ;;  %v1577_v49 = vpop.f32.mrb[12].mxu1  ;;  %v996_v16 = vld [vmem:[#allocation2 + $0x50] sm:$0xff]  ;;  %v1125_v7 = vmul.f32 %v2162_v28, %v979_v33  ;;  %v1212_v5 = vmul.f32 %v2172_v22, %v979_v33 }
 0x3a4   :  { %v1261_v56 = vadd.f32 %v2215_v38, %v1246_v39  ;;  %v1218_v20 = vadd.f32 %v1210_v52, %v1189_v62  ;;  %v950_v8 = vpop.f32.mrb[13].mxu1  ;;  %v1054_v17 = vld [vmem:[#allocation2 + $0x52] sm:$0xff]  ;;  %v974_v19 = vmul.f32 0.01, %v1577_v49  ;;  %v1009_v26 = vmul.f32 %v2131_v25, %v996_v16 }
 0x3a5   :  { %v1219_v14 = vadd.f32 %v1211_v59, %v1190_v2  ;;  %v1161_v21 = vadd.f32 %v1153_v15, %v1132_v43  ;;  %v1096_v6 = vmul.f32 %v2156_v37, %v996_v16  ;;  %vm966_vm10 = vcmp.gt.f32.partialorder %v1577_v49, 0.0 }
 0x3a6   :  { %vm1269_vm7 = vcmp.gt.f32.partialorder %v1261_v56, 0.0  ;;  %v1277_v23 = vmul.f32 0.01, %v1261_v56  ;;  %v1247_v50 = vadd.f32 %v1239_v61, %v1218_v20  ;;  %v1067_v29 = vmul.f32 %v2144_v32, %v1054_v17  ;;  %v1055_v20 = vld [vmem:[#allocation2 + $0x62] sm:$0xff] }
 0x3a7   :  { %v1248_v3 = vadd.f32 %v1240_v10, %v1219_v14  ;;  %v1183_v30 = vmul.f32 %v2183_v24, %v996_v16  ;;  %v1046_v57 = vadd.f32 %v1038_v55, %v1009_v26  ;;  %v1104_v13 = vadd.f32 %v1096_v6, %v1074_v36 }
 0x3a8   :  { %v1285_v11 = vsel %vm1269_vm7, %v1261_v56, %v1277_v23  ;;  %v1262_v51 = vadd.f32 %v2215_v38, %v1247_v50  ;;  %v1097_v35 = vmul.f32 %v2156_v37, %v997_v60  ;;  %v1154_v41 = vmul.f32 %v2178_v0, %v1054_v17 }
 0x3a9   :  { %1294 = vst.msk [vmem:[%s2329_s11] sm:$0xff] %vm1293_vm8, %v1285_v11  ;;  %v1263_v40 = vadd.f32 %v2215_v38, %v1248_v3  ;;  %v1191_v44 = vadd.f32 %v1183_v30, %v1161_v21  ;;  %v2252_v45 = vsel %vm966_vm10, %v1577_v49, %v974_v19  ;;  %v1075_v39 = vadd.f32 %v1067_v29, %v1046_v57 }
 0x3aa   :  { %vm1270_vm9 = vcmp.gt.f32.partialorder %v1262_v51, 0.0  ;;  %v1278_v18 = vmul.f32 0.01, %v1262_v51  ;;  %v1133_v48 = vadd.f32 %v1125_v7, %v1104_v13  ;;  %990 = vst [vmem:[#allocation2 + $0x81] sm:$0xff] %v2252_v45  ;;  %vm965_vm12 = vcmp.gt.f32.partialorder %v950_v8, 0.0 }
 0x3ab   :  { %vm1271_vm11 = vcmp.gt.f32.partialorder %v1263_v40, 0.0  ;;  %v1279_v34 = vmul.f32 0.01, %v1263_v40  ;;  %v1220_v33 = vadd.f32 %v1212_v5, %v1191_v44  ;;  %v1241_v62 = vmul.f32 %v2197_v42, %v1054_v17 }
 0x3ac   :  { %v1286_v27 = vsel %vm1270_vm9, %v1262_v51, %v1278_v18  ;;  %v973_v52 = vmul.f32 0.01, %v950_v8  ;;  %v1126_v53 = vmul.f32 %v2162_v28, %v2208_v63  ;;  %v1184_v4 = vmul.f32 %v2183_v24, %v997_v60 }
 0x3ad   :  { %1295 = vst.msk [vmem:[%s2329_s11 + $0x8] sm:$0xff] %vm1293_vm8, %v1286_v27  ;;  %v1287_v46 = vsel %vm1271_vm11, %v1263_v40, %v1279_v34  ;;  %v1105_v54 = vadd.f32 %v1097_v35, %v1075_v39  ;;  %v1162_v56 = vadd.f32 %v1154_v41, %v1133_v48  ;;  %v1010_v58 = vmul.f32 %v2131_v25, %v997_v60 }
 0x3ae   :  { %1296 = vst.msk [vmem:[%s2329_s11 + $0x10] sm:$0xff] %vm1293_vm8, %v1287_v46  ;;  %v1249_v61 = vadd.f32 %v1241_v62, %v1220_v33  ;;  %v981_v43 = vsel %vm965_vm12, %v950_v8, %v973_v52  ;;  %v1213_v31 = vmul.f32 %v2172_v22, %v2208_v63  ;;  %v1039_v49 = vmul.f32 %v2136_v47, %v2208_v63 }
 0x3af   :  { %v1192_v59 = vadd.f32 %v1184_v4, %v1162_v56  ;;  %989 = vst [vmem:[#allocation2 + $0x71] sm:$0xff] %v981_v43  ;;  %v1134_v2 = vadd.f32 %v1126_v53, %v1105_v54  ;;  %v1242_v50 = vmul.f32 %v2197_v42, %v1055_v20  ;;  %v1068_v8 = vmul.f32 %v2144_v32, %v1055_v20 }
 0x3b0   :  { %v1264_v23 = vadd.f32 %v2215_v38, %v1249_v61  ;;  %v1047_v10 = vadd.f32 %v1039_v49, %v1010_v58  ;;  %v1155_v15 = vmul.f32 %v2178_v0, %v1055_v20  ;;  %v1040_v18 = vmul.f32 %v2136_v47, %v981_v43 }
 0x3b1   :  { %v1221_v9 = vadd.f32 %v1213_v31, %v1192_v59  ;;  %v1085_v21 = vld [vmem:[#allocation2 + $0x80] sm:$0xff]  ;;  %v1127_v29 = vmul.f32 %v2162_v28, %v981_v43  ;;  %v1214_v47 = vmul.f32 %v2172_v22, %v981_v43  ;;  %v1128_v41 = vmul.f32 %v2162_v28, %v2252_v45 }
 0x3b2   :  { %vm1272_vm13 = vcmp.gt.f32.partialorder %v1264_v23, 0.0  ;;  %v1280_v14 = vmul.f32 0.01, %v1264_v23  ;;  %v1076_v63 = vadd.f32 %v1068_v8, %v1047_v10  ;;  %v1163_v55 = vadd.f32 %v1155_v15, %v1134_v2  ;;  %v1144_v34 = vld [vmem:[#allocation2 + $0x82] sm:$0xff] }
 0x3b3   :  { %v1250_v11 = vadd.f32 %v1242_v50, %v1221_v9  ;;  %v1099_v30 = vmul.f32 %v2156_v37, %v1085_v21  ;;  %v1186_v46 = vmul.f32 %v2183_v24, %v1085_v21  ;;  %v1157_v33 = vmul.f32 %v2178_v0, %v1144_v34 }
 0x3b4   :  { %v1288_v51 = vsel %vm1272_vm13, %v1264_v23, %v1280_v14  ;;  %v1215_v53 = vmul.f32 %v2172_v22, %v2252_v45  ;;  %v1216_v28 = vmul.f32 %v2172_v22, %v2115_v1  ;;  %v1244_v58 = vmul.f32 %v2197_v42, %v1144_v34 }
 0x3b5   :  { %v1265_v16 = vadd.f32 %v2215_v38, %v1250_v11  ;;  %1297 = vst.msk [vmem:[%s2329_s11 + $0x18] sm:$0xff] %vm1293_vm8, %v1288_v51 }
 0x3b6   :  { %v998_v36 = vld [vmem:[#allocation2 + $0x70] sm:$0xff] }
 0x3b7   :  { %v1056_v3 = vld [vmem:[#allocation2 + $0x72] sm:$0xff]  ;;  %vm1273_vm14 = vcmp.gt.f32.partialorder %v1265_v16, 0.0  ;;  %v1281_v17 = vmul.f32 0.01, %v1265_v16  ;;  %v1011_v7 = vmul.f32 %v2131_v25, %v998_v36  ;;  %v1098_v19 = vmul.f32 %v2156_v37, %v998_v36  ;;  %v1695_v37 = vld [vmem:[#allocation2] sm:$0xff] }
 0x3b8   :  { %v1185_v40 = vmul.f32 %v2183_v24, %v998_v36  ;;  %v1069_v6 = vmul.f32 %v2144_v32, %v1056_v3  ;;  %v1156_v13 = vmul.f32 %v2178_v0, %v1056_v3  ;;  %v1243_v32 = vmul.f32 %v2197_v42, %v1056_v3 }
 0x3b9   :  { %v1289_v60 = vsel %vm1273_vm14, %v1265_v16, %v1281_v17  ;;  %v1048_v26 = vadd.f32 %v1040_v18, %v1011_v7  ;;  %v1106_v27 = vadd.f32 %v1098_v19, %v1076_v63  ;;  %v1187_v52 = vmul.f32 %v1695_v37, %v2183_v24 }
 0x3ba   :  { %1298 = vst.msk [vmem:[%s2329_s11 + $0x20] sm:$0xff] %vm1293_vm8, %v1289_v60  ;;  %v1193_v25 = vadd.f32 %v1185_v40, %v1163_v55  ;;  %v1245_v0 = vmul.f32 %v2197_v42, %v2120_v12 }
 0x3bb   :  { %v1077_v5 = vadd.f32 %v1069_v6, %v1048_v26  ;;  %v1135_v57 = vadd.f32 %v1127_v29, %v1106_v27 }
 0x3bc   :  { %v1222_v35 = vadd.f32 %v1214_v47, %v1193_v25 }
 0x3bd   :  { %v1107_v44 = vadd.f32 %v1099_v30, %v1077_v5  ;;  %v1164_v39 = vadd.f32 %v1156_v13, %v1135_v57 }
 0x3be   :  { %v1251_v48 = vadd.f32 %v1243_v32, %v1222_v35 }
 0x3bf   :  { %v1136_v62 = vadd.f32 %v1128_v41, %v1107_v44  ;;  %v1194_v4 = vadd.f32 %v1186_v46, %v1164_v39 }
 0x3c0   :  { %v1266_v54 = vadd.f32 %v2215_v38, %v1251_v48 }
 0x3c1   :  { %v1165_v56 = vadd.f32 %v1157_v33, %v1136_v62  ;;  %v1223_v20 = vadd.f32 %v1215_v53, %v1194_v4 }
 0x3c2   :  { %vm1274_vm15 = vcmp.gt.f32.partialorder %v1266_v54, 0.0  ;;  %v1282_v61 = vmul.f32 0.01, %v1266_v54 }
 0x3c3   :  { %v1195_v43 = vadd.f32 %v1187_v52, %v1165_v56  ;;  %v1252_v24 = vadd.f32 %v1244_v58, %v1223_v20 }
 0x3c4   :  { %v1290_v31 = vsel %vm1274_vm15, %v1266_v54, %v1282_v61 }
 0x3c5   :  { %v1224_v59 = vadd.f32 %v1216_v28, %v1195_v43  ;;  %1299 = vst.msk [vmem:[%s2329_s11 + $0x28] sm:$0xff] %vm1293_vm8, %v1290_v31  ;;  %v1267_v1 = vadd.f32 %v2215_v38, %v1252_v24 }
 0x3c7   :  { %v1253_v22 = vadd.f32 %v1245_v0, %v1224_v59  ;;  %vm1275_vm0 = vcmp.gt.f32.partialorder %v1267_v1, 0.0  ;;  %v1283_v45 = vmul.f32 0.01, %v1267_v1 }
 0x3c9   :  { %v1268_v2 = vadd.f32 %v2215_v38, %v1253_v22  ;;  %v1291_v49 = vsel %vm1275_vm0, %v1267_v1, %v1283_v45 }
 0x3ca   :  { %1300 = vst.msk [vmem:[%s2329_s11 + $0x30] sm:$0xff] %vm1293_vm8, %v1291_v49 }
 0x3cb   :  { %vm1276_vm1 = vcmp.gt.f32.partialorder %v1268_v2, 0.0  ;;  %v1284_v23 = vmul.f32 0.01, %v1268_v2 }
 0x3cd   :  { %v1292_v12 = vsel %vm1276_vm1, %v1268_v2, %v1284_v23 }
 0x3ce   :  { %1301 = vst.msk [vmem:[%s2329_s11 + $0x38] sm:$0xff] %vm1293_vm8, %v1292_v12 }

</bundles_post_ra>
